<compile_context>
chip_gen: v7x
topology: tpu7x:2x2x1
jax: 0.10.0
libtpu: 0.0.40
codegen_flags: <defaults>
</compile_context>

<pallas_src>
import functools

import jax
import jax.numpy as jnp
from jax.experimental import pallas as pl
from jax.experimental.pallas import tpu as pltpu


def _round_up(x: int, m: int) -> int:
    return ((x + m - 1) // m) * m


def _arch_params():
    """Per-generation tile caps and VMEM limits (v5e / v6e / v7x-class)."""
    try:
        kind = jax.devices()[0].device_kind.lower()
    except Exception:
        kind = ""
    is_v5e = ("v5e" in kind) or ("v5 lite" in kind) or ("v5litepod" in kind)
    try:
        vmem_cap = int(getattr(pltpu.get_tpu_info(), "vmem_capacity_bytes",
                               128 * 1024 * 1024))
    except Exception:
        vmem_cap = 128 * 1024 * 1024
    small_vmem = vmem_cap <= 64 * 1024 * 1024          # v7x-class: 64 MiB per TensorCore
    if is_v5e:
        tn_cap, tk_cap = 128, 256                      # native 128x128 MXU on v5e
    else:
        tn_cap, tk_cap = 256, (512 if small_vmem else 1024)
    vmem_limit = (48 if small_vmem else 64) * 1024 * 1024
    return tn_cap, tk_cap, vmem_limit


# ---------------------------------------------------------------------------
# Fused layer kernel: im2col-GEMM + bias + InstanceNorm + LeakyReLU
# ---------------------------------------------------------------------------

def _fused_conv_layer_kernel(*refs, has_bias: bool, apply_in: bool,
                             apply_lrelu: bool, hw: int, eps: float,
                             negative_slope: float = 0.2):
    """One (sample, Cout-tile) block of an im2col'd conv.

    Grid = (batch, Cout tiles, K tiles).  The A block holds one full sample
    (OH*OW rows padded to a multiple of 16) so the InstanceNorm statistics for
    every channel of that sample can be reduced over the sublane axis in the
    epilogue at the last K step.  Padded rows / padded K columns are zero, so
    the masked statistics below are exact.
    """
    if has_bias:
        a_ref, w_ref, b_ref, o_ref, acc_ref = refs
    else:
        a_ref, w_ref, o_ref, acc_ref = refs
        b_ref = None

    k = pl.program_id(2)

    @pl.when(k == 0)
    def _():
        acc_ref[...] = jnp.zeros_like(acc_ref)

    acc_ref[...] += jnp.dot(a_ref[0], w_ref[...],
                            preferred_element_type=jnp.float32)

    @pl.when(k == pl.num_programs(2) - 1)
    def _():
        acc = acc_ref[...]
        if has_bias:
            acc = acc + b_ref[...]                      # (1, tn) broadcast over rows
        if apply_in:
            # InstanceNorm2d(affine=False): biased stats over the true OH*OW
            # rows (padded rows masked), two-pass variance for stability.
            inv_hw = 1.0 / float(hw)
            rows = jax.lax.broadcasted_iota(jnp.int32, acc.shape, 0)
            valid = rows < hw
            xm = jnp.where(valid, acc, 0.0)
            mean = jnp.sum(xm, axis=0, keepdims=True) * inv_hw
            cen = jnp.where(valid, acc - mean, 0.0)
            var = jnp.sum(cen * cen, axis=0, keepdims=True) * inv_hw
            acc = (acc - mean) * jax.lax.rsqrt(var + eps)
        if apply_lrelu:
            acc = jnp.where(acc >= 0, acc, negative_slope * acc)
        o_ref[0] = acc.astype(o_ref.dtype)


# ---------------------------------------------------------------------------
# Layer wrapper (im2col glue + pallas_call)
# ---------------------------------------------------------------------------

def conv_layer_pallas(x_nhwc, w_oihw, bias, *, stride: int, pad: int = 2,
                      apply_in: bool, apply_lrelu: bool, eps: float = 1e-5):
    """Conv2d(k=4) [+bias] [+InstanceNorm] [+LeakyReLU(0.2)] in one Pallas call.

    x_nhwc: (N, H, W, Cin).  Returns (N, OH, OW, Cout) in bf16.
    """
    N, H, W, Cin = x_nhwc.shape
    Cout, _, KH, KW = w_oihw.shape
    OH = (H + 2 * pad - KH) // stride + 1
    OW = (W + 2 * pad - KW) // stride + 1
    OHW = OH * OW
    K = KH * KW * Cin

    # im2col in bf16 (XLA glue).
    # TODO(synk): fold the KH*KW taps (and stride phases) into the K grid axis
    # via strided/Element index_maps on the padded NHWC input instead of
    # materializing the 16x patch blowup in HBM on large images.
    xpad = jnp.pad(x_nhwc.astype(jnp.bfloat16),
                   ((0, 0), (pad, pad), (pad, pad), (0, 0)))
    patches = [xpad[:, kh:kh + stride * OH:stride, kw:kw + stride * OW:stride, :]
               for kh in range(KH) for kw in range(KW)]
    A = jnp.concatenate(patches, axis=-1).reshape(N, OHW, K)

    # Per-sample row padding: multiple of 16 (bf16 packs 2 rows per sublane).
    OHWp = _round_up(OHW, 16)
    if OHWp != OHW:
        A = jnp.pad(A, ((0, 0), (0, OHWp - OHW), (0, 0)))

    # weight (Cout, Cin, KH, KW) -> (KH, KW, Cin, Cout) -> (KH*KW*Cin, Cout)
    Wmat = jnp.transpose(w_oihw, (2, 3, 1, 0)).reshape(K, Cout).astype(jnp.bfloat16)

    tn_cap, tk_cap, vmem_limit = _arch_params()

    # MXU-native, lane-dense tiles: Cout and K padded to 128-lane multiples.
    tn = min(tn_cap, _round_up(Cout, 128))
    Np = _round_up(Cout, tn)
    tk = min(tk_cap, _round_up(K, 128))

    # Shrink tk if the per-step working set would not fit under the VMEM limit.
    def _need(t):
        return (2 * OHWp * t * 2        # double-buffered A tile (bf16)
                + 2 * t * tn * 2        # double-buffered W tile (bf16)
                + OHWp * tn * 4         # f32 accumulator scratch
                + 2 * OHWp * tn * 2)    # double-buffered out tile (bf16)
    while tk > 128 and _need(tk) > vmem_limit - (4 << 20):
        tk = _round_up(tk // 2, 128)
    Kp = _round_up(K, tk)

    if Kp != K:
        A = jnp.pad(A, ((0, 0), (0, 0), (0, Kp - K)))
        Wmat = jnp.pad(Wmat, ((0, Kp - K), (0, 0)))
    if Np != Cout:
        Wmat = jnp.pad(Wmat, ((0, 0), (0, Np - Cout)))

    has_bias = bias is not None
    inputs = [A, Wmat]
    in_specs = [
        pl.BlockSpec((1, OHWp, tk), lambda n, j, k: (n, 0, k)),
        pl.BlockSpec((tk, tn), lambda n, j, k: (k, j)),
    ]
    if has_bias:
        b = jnp.pad(bias.astype(jnp.float32), (0, Np - Cout)).reshape(1, Np)
        inputs.append(b)
        in_specs.append(pl.BlockSpec((1, tn), lambda n, j, k: (0, j)))

    # (batch, Cout tiles) parallel (>= 2 steps when N >= 2 -> both v7x TCs busy),
    # reduction axis K last and "arbitrary".
    out = pl.pallas_call(
        functools.partial(_fused_conv_layer_kernel, has_bias=has_bias,
                          apply_in=apply_in, apply_lrelu=apply_lrelu,
                          hw=OHW, eps=eps),
        out_shape=jax.ShapeDtypeStruct((N, OHWp, Np), jnp.bfloat16),
        grid=(N, Np // tn, Kp // tk),
        in_specs=in_specs,
        out_specs=pl.BlockSpec((1, OHWp, tn), lambda n, j, k: (n, 0, j)),
        scratch_shapes=[pltpu.VMEM((OHWp, tn), jnp.float32)],
        compiler_params=pltpu.CompilerParams(
            dimension_semantics=("parallel", "parallel", "arbitrary"),
            vmem_limit_bytes=vmem_limit),
    )(*inputs)

    if OHWp != OHW or Np != Cout:
        out = out[:, :OHW, :Cout]
    return out.reshape(N, OH, OW, Cout)


# ---------------------------------------------------------------------------
# NLayerDiscriminator: parameters + forward
# ---------------------------------------------------------------------------

def init_nlayer_discriminator_params(key, input_nc: int, ndf: int,
                                     n_layers_d: int = 4, gain: float = 0.02):
    """Deterministic init mirroring BaseNetwork.init_weights('normal', 0.02)."""
    params = []
    kw = 4
    nf = ndf
    # layer 0: conv with bias, no norm
    key, sub = jax.random.split(key)
    params.append({
        "w": gain * jax.random.normal(sub, (nf, input_nc, kw, kw), jnp.float32),
        "b": jnp.zeros((nf,), jnp.float32),
        "stride": 2, "norm": False,
    })
    # layers 1 .. n_layers_d-1: conv (no bias, instance norm strips it) + IN
    for n in range(1, n_layers_d):
        nf_prev = nf
        nf = min(nf * 2, 512)
        stride = 1 if n == n_layers_d - 1 else 2
        key, sub = jax.random.split(key)
        params.append({
            "w": gain * jax.random.normal(sub, (nf, nf_prev, kw, kw), jnp.float32),
            "b": None,
            "stride": stride, "norm": True,
        })
    # final layer: conv to 1 channel, bias, no norm, no activation
    key, sub = jax.random.split(key)
    params.append({
        "w": gain * jax.random.normal(sub, (1, nf, kw, kw), jnp.float32),
        "b": jnp.zeros((1,), jnp.float32),
        "stride": 1, "norm": False,
    })
    return params


def nlayer_discriminator_forward(params, x_nchw):
    """Returns the 5 intermediate feature maps (PyTorch results[1:]), NCHW f32."""
    x = jnp.transpose(x_nchw, (0, 2, 3, 1))  # NCHW -> NHWC; chain stays bf16 NHWC
    results = []
    n_layers = len(params)
    for idx, p in enumerate(params):
        is_last = idx == n_layers - 1
        x = conv_layer_pallas(x, p["w"], p["b"], stride=p["stride"], pad=2,
                              apply_in=p["norm"], apply_lrelu=not is_last)
        results.append(jnp.transpose(x, (0, 3, 1, 2)).astype(jnp.float32))
    return results


# ---------------------------------------------------------------------------
# main
# ---------------------------------------------------------------------------

if __name__ == "__main__":
    key = jax.random.PRNGKey(0)
    k_x, k_p = jax.random.split(key)

    # opt.output_nc = 4, opt.ndf = 8, batch=2, spatial=16x16
    N, C, H, W = 2, 4, 16, 16
    ndf = 8
    x = jax.random.normal(k_x, (N, C, H, W), jnp.float32)

    params = init_nlayer_discriminator_params(k_p, input_nc=C, ndf=ndf)

    fwd = jax.jit(lambda inp: nlayer_discriminator_forward(params, inp))
    feats = jax.block_until_ready(fwd(x))

    expected_shapes = [(2, 8, 9, 9), (2, 16, 5, 5), (2, 32, 3, 3),
                       (2, 64, 4, 4), (2, 1, 5, 5)]
    assert [tuple(f.shape) for f in feats] == expected_shapes, \
        [tuple(f.shape) for f in feats]
    assert all(bool(jnp.all(jnp.isfinite(f))) for f in feats)

    print("KERNEL_OK")
</pallas_src>

<mosaic_0001>
module attributes {stable_mosaic.version = 11 : i64} {
  func.func @_fused_conv_layer_kernel(%arg0: i32, %arg1: i32, %arg2: i32, %arg3: memref<1x96x128xbf16, #tpu.memory_space<vmem>>, %arg4: memref<128x128xbf16, #tpu.memory_space<vmem>>, %arg5: memref<1x128xf32, #tpu.memory_space<vmem>>, %arg6: memref<1x96x128xbf16, #tpu.memory_space<vmem>>, %arg7: memref<96x128xf32, #tpu.memory_space<vmem>>) attributes {dimension_semantics = [#tpu.dimension_semantics<parallel>, #tpu.dimension_semantics<parallel>, #tpu.dimension_semantics<arbitrary>], iteration_bounds = array<i64: 2, 1, 1>, scalar_prefetch = 0 : i64, scratch_operands = 1 : i64, tpu.core_type = #tpu.core_type<tc>, window_params = [{transform_indices = @transform_0, window_bounds = array<i64: 1, 96, 128>}, {transform_indices = @transform_1, window_bounds = array<i64: 128, 128>}, {transform_indices = @transform_2, window_bounds = array<i64: 1, 128>}, {transform_indices = @transform_3, window_bounds = array<i64: 1, 96, 128>}]} {
    %c0_i32 = arith.constant 0 : i32
    %0 = arith.cmpi eq, %arg2, %c0_i32 : i32
    %1 = arith.extui %0 : i1 to i32
    %c0_i32_0 = arith.constant 0 : i32
    %2 = arith.cmpi ne, %1, %c0_i32_0 : i32
    scf.if %2 {
      %cst_11 = arith.constant 0.000000e+00 : f32
      %13 = vector.broadcast %cst_11 : f32 to vector<96x128xf32>
      %c0_12 = arith.constant 0 : index
      %c0_13 = arith.constant 0 : index
      %14 = vector.load %arg7[%c0_12, %c0_13] : memref<96x128xf32, #tpu.memory_space<vmem>>, vector<96x128xf32>
      tpu.vector_store %arg7[%c0_12, %c0_13], %13 {strides = array<i32>} : memref<96x128xf32, #tpu.memory_space<vmem>>, vector<96x128xf32>,
    } else {
    }
    %c0 = arith.constant 0 : index
    %c0_1 = arith.constant 0 : index
    %3 = vector.load %arg7[%c0, %c0_1] : memref<96x128xf32, #tpu.memory_space<vmem>>, vector<96x128xf32>
    %c0_2 = arith.constant 0 : index
    %c0_3 = arith.constant 0 : index
    %c0_4 = arith.constant 0 : index
    %4 = vector.load %arg3[%c0_2, %c0_3, %c0_4] : memref<1x96x128xbf16, #tpu.memory_space<vmem>>, vector<1x96x128xbf16>
    %5 = vector.shape_cast %4 : vector<1x96x128xbf16> to vector<96x128xbf16>
    %c0_5 = arith.constant 0 : index
    %c0_6 = arith.constant 0 : index
    %6 = vector.load %arg4[%c0_5, %c0_6] : memref<128x128xbf16, #tpu.memory_space<vmem>>, vector<128x128xbf16>
    %cst = arith.constant dense<0.000000e+00> : vector<96x128xf32>
    %7 = tpu.matmul %5, %6, %cst {dimension_numbers = #tpu.dot_dimension_numbers<[1], [0], [0], [1], [0, 0, 1, 1], [], []>} : vector<96x128xbf16>, vector<128x128xbf16>, vector<96x128xf32> -> vector<96x128xf32>
    %8 = arith.addf %3, %7 : vector<96x128xf32>
    %c0_7 = arith.constant 0 : index
    %c0_8 = arith.constant 0 : index
    %9 = vector.load %arg7[%c0_7, %c0_8] : memref<96x128xf32, #tpu.memory_space<vmem>>, vector<96x128xf32>
    tpu.vector_store %arg7[%c0_7, %c0_8], %8 {strides = array<i32>} : memref<96x128xf32, #tpu.memory_space<vmem>>, vector<96x128xf32>,
    %c0_i32_9 = arith.constant 0 : i32
    %10 = arith.cmpi eq, %arg2, %c0_i32_9 : i32
    %11 = arith.extui %10 : i1 to i32
    %c0_i32_10 = arith.constant 0 : i32
    %12 = arith.cmpi ne, %11, %c0_i32_10 : i32
    scf.if %12 {
      %c0_11 = arith.constant 0 : index
      %c0_12 = arith.constant 0 : index
      %13 = vector.load %arg7[%c0_11, %c0_12] : memref<96x128xf32, #tpu.memory_space<vmem>>, vector<96x128xf32>
      %c0_13 = arith.constant 0 : index
      %c0_14 = arith.constant 0 : index
      %14 = vector.load %arg5[%c0_13, %c0_14] : memref<1x128xf32, #tpu.memory_space<vmem>>, vector<1x128xf32>
      %15 = vector.broadcast %14 : vector<1x128xf32> to vector<96x128xf32>
      %16 = arith.addf %13, %15 : vector<96x128xf32>
      %cst_15 = arith.constant 0.000000e+00 : f32
      %17 = vector.broadcast %cst_15 : f32 to vector<96x128xf32>
      %18 = arith.cmpf oge, %16, %17 : vector<96x128xf32>
      %cst_16 = arith.constant 2.000000e-01 : f32
      %19 = vector.broadcast %cst_16 : f32 to vector<96x128xf32>
      %20 = arith.mulf %19, %16 : vector<96x128xf32>
      %21 = arith.select %18, %16, %20 : vector<96x128xi1>, vector<96x128xf32>
      %22 = arith.truncf %21 : vector<96x128xf32> to vector<96x128xbf16>
      %c0_17 = arith.constant 0 : index
      %c0_18 = arith.constant 0 : index
      %c0_19 = arith.constant 0 : index
      %23 = vector.load %arg6[%c0_17, %c0_18, %c0_19] : memref<1x96x128xbf16, #tpu.memory_space<vmem>>, vector<1x96x128xbf16>
      %24 = vector.shape_cast %23 : vector<1x96x128xbf16> to vector<96x128xbf16>
      %25 = vector.shape_cast %22 : vector<96x128xbf16> to vector<1x96x128xbf16>
      tpu.vector_store %arg6[%c0_17, %c0_18, %c0_19], %25 {strides = array<i32>} : memref<1x96x128xbf16, #tpu.memory_space<vmem>>, vector<1x96x128xbf16>,
    } else {
    }
    return
  }
  func.func @transform_0(%arg0: i32, %arg1: i32, %arg2: i32) -> (i32, i32, i32) {
    %c0_i32 = arith.constant 0 : i32
    %c0_i32_0 = arith.constant 0 : i32
    return %arg0, %c0_i32, %arg2 : i32, i32, i32
  }
  func.func @transform_1(%arg0: i32, %arg1: i32, %arg2: i32) -> (i32, i32) {
    %c0_i32 = arith.constant 0 : i32
    return %arg2, %arg1 : i32, i32
  }
  func.func @transform_2(%arg0: i32, %arg1: i32, %arg2: i32) -> (i32, i32) {
    %c0_i32 = arith.constant 0 : i32
    %c0_i32_0 = arith.constant 0 : i32
    return %c0_i32, %arg1 : i32, i32
  }
  func.func @transform_3(%arg0: i32, %arg1: i32, %arg2: i32) -> (i32, i32, i32) {
    %c0_i32 = arith.constant 0 : i32
    %c0_i32_0 = arith.constant 0 : i32
    return %arg0, %c0_i32, %arg1 : i32, i32, i32
  }
}

module attributes {stable_mosaic.version = 11 : i64} {
  func.func @_fused_conv_layer_kernel(%arg0: i32, %arg1: i32, %arg2: i32, %arg3: memref<1x32x128xbf16, #tpu.memory_space<vmem>>, %arg4: memref<128x128xbf16, #tpu.memory_space<vmem>>, %arg5: memref<1x32x128xbf16, #tpu.memory_space<vmem>>, %arg6: memref<32x128xf32, #tpu.memory_space<vmem>>) attributes {dimension_semantics = [#tpu.dimension_semantics<parallel>, #tpu.dimension_semantics<parallel>, #tpu.dimension_semantics<arbitrary>], iteration_bounds = array<i64: 2, 1, 1>, scalar_prefetch = 0 : i64, scratch_operands = 1 : i64, tpu.core_type = #tpu.core_type<tc>, window_params = [{transform_indices = @transform_0, window_bounds = array<i64: 1, 32, 128>}, {transform_indices = @transform_1, window_bounds = array<i64: 128, 128>}, {transform_indices = @transform_2, window_bounds = array<i64: 1, 32, 128>}]} {
    %c0_i32 = arith.constant 0 : i32
    %0 = arith.cmpi eq, %arg2, %c0_i32 : i32
    %1 = arith.extui %0 : i1 to i32
    %c0_i32_0 = arith.constant 0 : i32
    %2 = arith.cmpi ne, %1, %c0_i32_0 : i32
    scf.if %2 {
      %cst_11 = arith.constant 0.000000e+00 : f32
      %13 = vector.broadcast %cst_11 : f32 to vector<32x128xf32>
      %c0_12 = arith.constant 0 : index
      %c0_13 = arith.constant 0 : index
      %14 = vector.load %arg6[%c0_12, %c0_13] : memref<32x128xf32, #tpu.memory_space<vmem>>, vector<32x128xf32>
      tpu.vector_store %arg6[%c0_12, %c0_13], %13 {strides = array<i32>} : memref<32x128xf32, #tpu.memory_space<vmem>>, vector<32x128xf32>,
    } else {
    }
    %c0 = arith.constant 0 : index
    %c0_1 = arith.constant 0 : index
    %3 = vector.load %arg6[%c0, %c0_1] : memref<32x128xf32, #tpu.memory_space<vmem>>, vector<32x128xf32>
    %c0_2 = arith.constant 0 : index
    %c0_3 = arith.constant 0 : index
    %c0_4 = arith.constant 0 : index
    %4 = vector.load %arg3[%c0_2, %c0_3, %c0_4] : memref<1x32x128xbf16, #tpu.memory_space<vmem>>, vector<1x32x128xbf16>
    %5 = vector.shape_cast %4 : vector<1x32x128xbf16> to vector<32x128xbf16>
    %c0_5 = arith.constant 0 : index
    %c0_6 = arith.constant 0 : index
    %6 = vector.load %arg4[%c0_5, %c0_6] : memref<128x128xbf16, #tpu.memory_space<vmem>>, vector<128x128xbf16>
    %cst = arith.constant dense<0.000000e+00> : vector<32x128xf32>
    %7 = tpu.matmul %5, %6, %cst {dimension_numbers = #tpu.dot_dimension_numbers<[1], [0], [0], [1], [0, 0, 1, 1], [], []>} : vector<32x128xbf16>, vector<128x128xbf16>, vector<32x128xf32> -> vector<32x128xf32>
    %8 = arith.addf %3, %7 : vector<32x128xf32>
    %c0_7 = arith.constant 0 : index
    %c0_8 = arith.constant 0 : index
    %9 = vector.load %arg6[%c0_7, %c0_8] : memref<32x128xf32, #tpu.memory_space<vmem>>, vector<32x128xf32>
    tpu.vector_store %arg6[%c0_7, %c0_8], %8 {strides = array<i32>} : memref<32x128xf32, #tpu.memory_space<vmem>>, vector<32x128xf32>,
    %c0_i32_9 = arith.constant 0 : i32
    %10 = arith.cmpi eq, %arg2, %c0_i32_9 : i32
    %11 = arith.extui %10 : i1 to i32
    %c0_i32_10 = arith.constant 0 : i32
    %12 = arith.cmpi ne, %11, %c0_i32_10 : i32
    scf.if %12 {
      %c0_11 = arith.constant 0 : index
      %c0_12 = arith.constant 0 : index
      %13 = vector.load %arg6[%c0_11, %c0_12] : memref<32x128xf32, #tpu.memory_space<vmem>>, vector<32x128xf32>
      %14 = tpu.iota {dimensions = array<i32: 0>} : vector<32x128xi32>
      %c25_i32 = arith.constant 25 : i32
      %15 = vector.broadcast %c25_i32 : i32 to vector<32x128xi32>
      %16 = arith.cmpi slt, %14, %15 : vector<32x128xi32>
      %cst_13 = arith.constant 0.000000e+00 : f32
      %17 = vector.broadcast %cst_13 : f32 to vector<32x128xf32>
      %18 = arith.select %16, %13, %17 : vector<32x128xi1>, vector<32x128xf32>
      %cst_14 = arith.constant dense<0.000000e+00> : vector<128xf32>
      %19 = vector.multi_reduction <add>, %18, %cst_14 [0] : vector<32x128xf32> to vector<128xf32>
      %20 = vector.shape_cast %19 : vector<128xf32> to vector<1x128xf32>
      %cst_15 = arith.constant 4.000000e-02 : f32
      %21 = vector.broadcast %cst_15 : f32 to vector<1x128xf32>
      %22 = arith.mulf %20, %21 : vector<1x128xf32>
      %23 = vector.broadcast %22 : vector<1x128xf32> to vector<32x128xf32>
      %24 = arith.subf %13, %23 : vector<32x128xf32>
      %cst_16 = arith.constant 0.000000e+00 : f32
      %25 = vector.broadcast %cst_16 : f32 to vector<32x128xf32>
      %26 = arith.select %16, %24, %25 : vector<32x128xi1>, vector<32x128xf32>
      %27 = arith.mulf %26, %26 : vector<32x128xf32>
      %cst_17 = arith.constant dense<0.000000e+00> : vector<128xf32>
      %28 = vector.multi_reduction <add>, %27, %cst_17 [0] : vector<32x128xf32> to vector<128xf32>
      %29 = vector.shape_cast %28 : vector<128xf32> to vector<1x128xf32>
      %cst_18 = arith.constant 4.000000e-02 : f32
      %30 = vector.broadcast %cst_18 : f32 to vector<1x128xf32>
      %31 = arith.mulf %29, %30 : vector<1x128xf32>
      %32 = vector.broadcast %22 : vector<1x128xf32> to vector<32x128xf32>
      %33 = arith.subf %13, %32 : vector<32x128xf32>
      %cst_19 = arith.constant 9.99999974E-6 : f32
      %34 = vector.broadcast %cst_19 : f32 to vector<1x128xf32>
      %35 = arith.addf %31, %34 : vector<1x128xf32>
      %36 = math.rsqrt %35 : vector<1x128xf32>
      %37 = vector.broadcast %36 : vector<1x128xf32> to vector<32x128xf32>
      %38 = arith.mulf %33, %37 : vector<32x128xf32>
      %cst_20 = arith.constant 0.000000e+00 : f32
      %39 = vector.broadcast %cst_20 : f32 to vector<32x128xf32>
      %40 = arith.cmpf oge, %38, %39 : vector<32x128xf32>
      %cst_21 = arith.constant 2.000000e-01 : f32
      %41 = vector.broadcast %cst_21 : f32 to vector<32x128xf32>
      %42 = arith.mulf %41, %38 : vector<32x128xf32>
      %43 = arith.select %40, %38, %42 : vector<32x128xi1>, vector<32x128xf32>
      %44 = arith.truncf %43 : vector<32x128xf32> to vector<32x128xbf16>
      %c0_22 = arith.constant 0 : index
      %c0_23 = arith.constant 0 : index
      %c0_24 = arith.constant 0 : index
      %45 = vector.load %arg5[%c0_22, %c0_23, %c0_24] : memref<1x32x128xbf16, #tpu.memory_space<vmem>>, vector<1x32x128xbf16>
      %46 = vector.shape_cast %45 : vector<1x32x128xbf16> to vector<32x128xbf16>
      %47 = vector.shape_cast %44 : vector<32x128xbf16> to vector<1x32x128xbf16>
      tpu.vector_store %arg5[%c0_22, %c0_23, %c0_24], %47 {strides = array<i32>} : memref<1x32x128xbf16, #tpu.memory_space<vmem>>, vector<1x32x128xbf16>,
    } else {
    }
    return
  }
  func.func @transform_0(%arg0: i32, %arg1: i32, %arg2: i32) -> (i32, i32, i32) {
    %c0_i32 = arith.constant 0 : i32
    %c0_i32_0 = arith.constant 0 : i32
    return %arg0, %c0_i32, %arg2 : i32, i32, i32
  }
  func.func @transform_1(%arg0: i32, %arg1: i32, %arg2: i32) -> (i32, i32) {
    %c0_i32 = arith.constant 0 : i32
    return %arg2, %arg1 : i32, i32
  }
  func.func @transform_2(%arg0: i32, %arg1: i32, %arg2: i32) -> (i32, i32, i32) {
    %c0_i32 = arith.constant 0 : i32
    %c0_i32_0 = arith.constant 0 : i32
    return %arg0, %c0_i32, %arg1 : i32, i32, i32
  }
}

module attributes {stable_mosaic.version = 11 : i64} {
  func.func @_fused_conv_layer_kernel(%arg0: i32, %arg1: i32, %arg2: i32, %arg3: memref<1x16x256xbf16, #tpu.memory_space<vmem>>, %arg4: memref<256x128xbf16, #tpu.memory_space<vmem>>, %arg5: memref<1x16x128xbf16, #tpu.memory_space<vmem>>, %arg6: memref<16x128xf32, #tpu.memory_space<vmem>>) attributes {dimension_semantics = [#tpu.dimension_semantics<parallel>, #tpu.dimension_semantics<parallel>, #tpu.dimension_semantics<arbitrary>], iteration_bounds = array<i64: 2, 1, 1>, scalar_prefetch = 0 : i64, scratch_operands = 1 : i64, tpu.core_type = #tpu.core_type<tc>, window_params = [{transform_indices = @transform_0, window_bounds = array<i64: 1, 16, 256>}, {transform_indices = @transform_1, window_bounds = array<i64: 256, 128>}, {transform_indices = @transform_2, window_bounds = array<i64: 1, 16, 128>}]} {
    %c0_i32 = arith.constant 0 : i32
    %0 = arith.cmpi eq, %arg2, %c0_i32 : i32
    %1 = arith.extui %0 : i1 to i32
    %c0_i32_0 = arith.constant 0 : i32
    %2 = arith.cmpi ne, %1, %c0_i32_0 : i32
    scf.if %2 {
      %cst_11 = arith.constant 0.000000e+00 : f32
      %13 = vector.broadcast %cst_11 : f32 to vector<16x128xf32>
      %c0_12 = arith.constant 0 : index
      %c0_13 = arith.constant 0 : index
      %14 = vector.load %arg6[%c0_12, %c0_13] : memref<16x128xf32, #tpu.memory_space<vmem>>, vector<16x128xf32>
      tpu.vector_store %arg6[%c0_12, %c0_13], %13 {strides = array<i32>} : memref<16x128xf32, #tpu.memory_space<vmem>>, vector<16x128xf32>,
    } else {
    }
    %c0 = arith.constant 0 : index
    %c0_1 = arith.constant 0 : index
    %3 = vector.load %arg6[%c0, %c0_1] : memref<16x128xf32, #tpu.memory_space<vmem>>, vector<16x128xf32>
    %c0_2 = arith.constant 0 : index
    %c0_3 = arith.constant 0 : index
    %c0_4 = arith.constant 0 : index
    %4 = vector.load %arg3[%c0_2, %c0_3, %c0_4] : memref<1x16x256xbf16, #tpu.memory_space<vmem>>, vector<1x16x256xbf16>
    %5 = vector.shape_cast %4 : vector<1x16x256xbf16> to vector<16x256xbf16>
    %c0_5 = arith.constant 0 : index
    %c0_6 = arith.constant 0 : index
    %6 = vector.load %arg4[%c0_5, %c0_6] : memref<256x128xbf16, #tpu.memory_space<vmem>>, vector<256x128xbf16>
    %cst = arith.constant dense<0.000000e+00> : vector<16x128xf32>
    %7 = tpu.matmul %5, %6, %cst {dimension_numbers = #tpu.dot_dimension_numbers<[1], [0], [0], [1], [0, 0, 1, 1], [], []>} : vector<16x256xbf16>, vector<256x128xbf16>, vector<16x128xf32> -> vector<16x128xf32>
    %8 = arith.addf %3, %7 : vector<16x128xf32>
    %c0_7 = arith.constant 0 : index
    %c0_8 = arith.constant 0 : index
    %9 = vector.load %arg6[%c0_7, %c0_8] : memref<16x128xf32, #tpu.memory_space<vmem>>, vector<16x128xf32>
    tpu.vector_store %arg6[%c0_7, %c0_8], %8 {strides = array<i32>} : memref<16x128xf32, #tpu.memory_space<vmem>>, vector<16x128xf32>,
    %c0_i32_9 = arith.constant 0 : i32
    %10 = arith.cmpi eq, %arg2, %c0_i32_9 : i32
    %11 = arith.extui %10 : i1 to i32
    %c0_i32_10 = arith.constant 0 : i32
    %12 = arith.cmpi ne, %11, %c0_i32_10 : i32
    scf.if %12 {
      %c0_11 = arith.constant 0 : index
      %c0_12 = arith.constant 0 : index
      %13 = vector.load %arg6[%c0_11, %c0_12] : memref<16x128xf32, #tpu.memory_space<vmem>>, vector<16x128xf32>
      %14 = tpu.iota {dimensions = array<i32: 0>} : vector<16x128xi32>
      %c9_i32 = arith.constant 9 : i32
      %15 = vector.broadcast %c9_i32 : i32 to vector<16x128xi32>
      %16 = arith.cmpi slt, %14, %15 : vector<16x128xi32>
      %cst_13 = arith.constant 0.000000e+00 : f32
      %17 = vector.broadcast %cst_13 : f32 to vector<16x128xf32>
      %18 = arith.select %16, %13, %17 : vector<16x128xi1>, vector<16x128xf32>
      %cst_14 = arith.constant dense<0.000000e+00> : vector<128xf32>
      %19 = vector.multi_reduction <add>, %18, %cst_14 [0] : vector<16x128xf32> to vector<128xf32>
      %20 = vector.shape_cast %19 : vector<128xf32> to vector<1x128xf32>
      %cst_15 = arith.constant 0.111111112 : f32
      %21 = vector.broadcast %cst_15 : f32 to vector<1x128xf32>
      %22 = arith.mulf %20, %21 : vector<1x128xf32>
      %23 = vector.broadcast %22 : vector<1x128xf32> to vector<16x128xf32>
      %24 = arith.subf %13, %23 : vector<16x128xf32>
      %cst_16 = arith.constant 0.000000e+00 : f32
      %25 = vector.broadcast %cst_16 : f32 to vector<16x128xf32>
      %26 = arith.select %16, %24, %25 : vector<16x128xi1>, vector<16x128xf32>
      %27 = arith.mulf %26, %26 : vector<16x128xf32>
      %cst_17 = arith.constant dense<0.000000e+00> : vector<128xf32>
      %28 = vector.multi_reduction <add>, %27, %cst_17 [0] : vector<16x128xf32> to vector<128xf32>
      %29 = vector.shape_cast %28 : vector<128xf32> to vector<1x128xf32>
      %cst_18 = arith.constant 0.111111112 : f32
      %30 = vector.broadcast %cst_18 : f32 to vector<1x128xf32>
      %31 = arith.mulf %29, %30 : vector<1x128xf32>
      %32 = vector.broadcast %22 : vector<1x128xf32> to vector<16x128xf32>
      %33 = arith.subf %13, %32 : vector<16x128xf32>
      %cst_19 = arith.constant 9.99999974E-6 : f32
      %34 = vector.broadcast %cst_19 : f32 to vector<1x128xf32>
      %35 = arith.addf %31, %34 : vector<1x128xf32>
      %36 = math.rsqrt %35 : vector<1x128xf32>
      %37 = vector.broadcast %36 : vector<1x128xf32> to vector<16x128xf32>
      %38 = arith.mulf %33, %37 : vector<16x128xf32>
      %cst_20 = arith.constant 0.000000e+00 : f32
      %39 = vector.broadcast %cst_20 : f32 to vector<16x128xf32>
      %40 = arith.cmpf oge, %38, %39 : vector<16x128xf32>
      %cst_21 = arith.constant 2.000000e-01 : f32
      %41 = vector.broadcast %cst_21 : f32 to vector<16x128xf32>
      %42 = arith.mulf %41, %38 : vector<16x128xf32>
      %43 = arith.select %40, %38, %42 : vector<16x128xi1>, vector<16x128xf32>
      %44 = arith.truncf %43 : vector<16x128xf32> to vector<16x128xbf16>
      %c0_22 = arith.constant 0 : index
      %c0_23 = arith.constant 0 : index
      %c0_24 = arith.constant 0 : index
      %45 = vector.load %arg5[%c0_22, %c0_23, %c0_24] : memref<1x16x128xbf16, #tpu.memory_space<vmem>>, vector<1x16x128xbf16>
      %46 = vector.shape_cast %45 : vector<1x16x128xbf16> to vector<16x128xbf16>
      %47 = vector.shape_cast %44 : vector<16x128xbf16> to vector<1x16x128xbf16>
      tpu.vector_store %arg5[%c0_22, %c0_23, %c0_24], %47 {strides = array<i32>} : memref<1x16x128xbf16, #tpu.memory_space<vmem>>, vector<1x16x128xbf16>,
    } else {
    }
    return
  }
  func.func @transform_0(%arg0: i32, %arg1: i32, %arg2: i32) -> (i32, i32, i32) {
    %c0_i32 = arith.constant 0 : i32
    %c0_i32_0 = arith.constant 0 : i32
    return %arg0, %c0_i32, %arg2 : i32, i32, i32
  }
  func.func @transform_1(%arg0: i32, %arg1: i32, %arg2: i32) -> (i32, i32) {
    %c0_i32 = arith.constant 0 : i32
    return %arg2, %arg1 : i32, i32
  }
  func.func @transform_2(%arg0: i32, %arg1: i32, %arg2: i32) -> (i32, i32, i32) {
    %c0_i32 = arith.constant 0 : i32
    %c0_i32_0 = arith.constant 0 : i32
    return %arg0, %c0_i32, %arg1 : i32, i32, i32
  }
}

module attributes {stable_mosaic.version = 11 : i64} {
  func.func @_fused_conv_layer_kernel(%arg0: i32, %arg1: i32, %arg2: i32, %arg3: memref<1x16x512xbf16, #tpu.memory_space<vmem>>, %arg4: memref<512x128xbf16, #tpu.memory_space<vmem>>, %arg5: memref<1x16x128xbf16, #tpu.memory_space<vmem>>, %arg6: memref<16x128xf32, #tpu.memory_space<vmem>>) attributes {dimension_semantics = [#tpu.dimension_semantics<parallel>, #tpu.dimension_semantics<parallel>, #tpu.dimension_semantics<arbitrary>], iteration_bounds = array<i64: 2, 1, 1>, scalar_prefetch = 0 : i64, scratch_operands = 1 : i64, tpu.core_type = #tpu.core_type<tc>, window_params = [{transform_indices = @transform_0, window_bounds = array<i64: 1, 16, 512>}, {transform_indices = @transform_1, window_bounds = array<i64: 512, 128>}, {transform_indices = @transform_2, window_bounds = array<i64: 1, 16, 128>}]} {
    %c0_i32 = arith.constant 0 : i32
    %0 = arith.cmpi eq, %arg2, %c0_i32 : i32
    %1 = arith.extui %0 : i1 to i32
    %c0_i32_0 = arith.constant 0 : i32
    %2 = arith.cmpi ne, %1, %c0_i32_0 : i32
    scf.if %2 {
      %cst_11 = arith.constant 0.000000e+00 : f32
      %13 = vector.broadcast %cst_11 : f32 to vector<16x128xf32>
      %c0_12 = arith.constant 0 : index
      %c0_13 = arith.constant 0 : index
      %14 = vector.load %arg6[%c0_12, %c0_13] : memref<16x128xf32, #tpu.memory_space<vmem>>, vector<16x128xf32>
      tpu.vector_store %arg6[%c0_12, %c0_13], %13 {strides = array<i32>} : memref<16x128xf32, #tpu.memory_space<vmem>>, vector<16x128xf32>,
    } else {
    }
    %c0 = arith.constant 0 : index
    %c0_1 = arith.constant 0 : index
    %3 = vector.load %arg6[%c0, %c0_1] : memref<16x128xf32, #tpu.memory_space<vmem>>, vector<16x128xf32>
    %c0_2 = arith.constant 0 : index
    %c0_3 = arith.constant 0 : index
    %c0_4 = arith.constant 0 : index
    %4 = vector.load %arg3[%c0_2, %c0_3, %c0_4] : memref<1x16x512xbf16, #tpu.memory_space<vmem>>, vector<1x16x512xbf16>
    %5 = vector.shape_cast %4 : vector<1x16x512xbf16> to vector<16x512xbf16>
    %c0_5 = arith.constant 0 : index
    %c0_6 = arith.constant 0 : index
    %6 = vector.load %arg4[%c0_5, %c0_6] : memref<512x128xbf16, #tpu.memory_space<vmem>>, vector<512x128xbf16>
    %cst = arith.constant dense<0.000000e+00> : vector<16x128xf32>
    %7 = tpu.matmul %5, %6, %cst {dimension_numbers = #tpu.dot_dimension_numbers<[1], [0], [0], [1], [0, 0, 1, 1], [], []>} : vector<16x512xbf16>, vector<512x128xbf16>, vector<16x128xf32> -> vector<16x128xf32>
    %8 = arith.addf %3, %7 : vector<16x128xf32>
    %c0_7 = arith.constant 0 : index
    %c0_8 = arith.constant 0 : index
    %9 = vector.load %arg6[%c0_7, %c0_8] : memref<16x128xf32, #tpu.memory_space<vmem>>, vector<16x128xf32>
    tpu.vector_store %arg6[%c0_7, %c0_8], %8 {strides = array<i32>} : memref<16x128xf32, #tpu.memory_space<vmem>>, vector<16x128xf32>,
    %c0_i32_9 = arith.constant 0 : i32
    %10 = arith.cmpi eq, %arg2, %c0_i32_9 : i32
    %11 = arith.extui %10 : i1 to i32
    %c0_i32_10 = arith.constant 0 : i32
    %12 = arith.cmpi ne, %11, %c0_i32_10 : i32
    scf.if %12 {
      %c0_11 = arith.constant 0 : index
      %c0_12 = arith.constant 0 : index
      %13 = vector.load %arg6[%c0_11, %c0_12] : memref<16x128xf32, #tpu.memory_space<vmem>>, vector<16x128xf32>
      %14 = tpu.iota {dimensions = array<i32: 0>} : vector<16x128xi32>
      %c16_i32 = arith.constant 16 : i32
      %15 = vector.broadcast %c16_i32 : i32 to vector<16x128xi32>
      %16 = arith.cmpi slt, %14, %15 : vector<16x128xi32>
      %cst_13 = arith.constant 0.000000e+00 : f32
      %17 = vector.broadcast %cst_13 : f32 to vector<16x128xf32>
      %18 = arith.select %16, %13, %17 : vector<16x128xi1>, vector<16x128xf32>
      %cst_14 = arith.constant dense<0.000000e+00> : vector<128xf32>
      %19 = vector.multi_reduction <add>, %18, %cst_14 [0] : vector<16x128xf32> to vector<128xf32>
      %20 = vector.shape_cast %19 : vector<128xf32> to vector<1x128xf32>
      %cst_15 = arith.constant 6.250000e-02 : f32
      %21 = vector.broadcast %cst_15 : f32 to vector<1x128xf32>
      %22 = arith.mulf %20, %21 : vector<1x128xf32>
      %23 = vector.broadcast %22 : vector<1x128xf32> to vector<16x128xf32>
      %24 = arith.subf %13, %23 : vector<16x128xf32>
      %cst_16 = arith.constant 0.000000e+00 : f32
      %25 = vector.broadcast %cst_16 : f32 to vector<16x128xf32>
      %26 = arith.select %16, %24, %25 : vector<16x128xi1>, vector<16x128xf32>
      %27 = arith.mulf %26, %26 : vector<16x128xf32>
      %cst_17 = arith.constant dense<0.000000e+00> : vector<128xf32>
      %28 = vector.multi_reduction <add>, %27, %cst_17 [0] : vector<16x128xf32> to vector<128xf32>
      %29 = vector.shape_cast %28 : vector<128xf32> to vector<1x128xf32>
      %cst_18 = arith.constant 6.250000e-02 : f32
      %30 = vector.broadcast %cst_18 : f32 to vector<1x128xf32>
      %31 = arith.mulf %29, %30 : vector<1x128xf32>
      %32 = vector.broadcast %22 : vector<1x128xf32> to vector<16x128xf32>
      %33 = arith.subf %13, %32 : vector<16x128xf32>
      %cst_19 = arith.constant 9.99999974E-6 : f32
      %34 = vector.broadcast %cst_19 : f32 to vector<1x128xf32>
      %35 = arith.addf %31, %34 : vector<1x128xf32>
      %36 = math.rsqrt %35 : vector<1x128xf32>
      %37 = vector.broadcast %36 : vector<1x128xf32> to vector<16x128xf32>
      %38 = arith.mulf %33, %37 : vector<16x128xf32>
      %cst_20 = arith.constant 0.000000e+00 : f32
      %39 = vector.broadcast %cst_20 : f32 to vector<16x128xf32>
      %40 = arith.cmpf oge, %38, %39 : vector<16x128xf32>
      %cst_21 = arith.constant 2.000000e-01 : f32
      %41 = vector.broadcast %cst_21 : f32 to vector<16x128xf32>
      %42 = arith.mulf %41, %38 : vector<16x128xf32>
      %43 = arith.select %40, %38, %42 : vector<16x128xi1>, vector<16x128xf32>
      %44 = arith.truncf %43 : vector<16x128xf32> to vector<16x128xbf16>
      %c0_22 = arith.constant 0 : index
      %c0_23 = arith.constant 0 : index
      %c0_24 = arith.constant 0 : index
      %45 = vector.load %arg5[%c0_22, %c0_23, %c0_24] : memref<1x16x128xbf16, #tpu.memory_space<vmem>>, vector<1x16x128xbf16>
      %46 = vector.shape_cast %45 : vector<1x16x128xbf16> to vector<16x128xbf16>
      %47 = vector.shape_cast %44 : vector<16x128xbf16> to vector<1x16x128xbf16>
      tpu.vector_store %arg5[%c0_22, %c0_23, %c0_24], %47 {strides = array<i32>} : memref<1x16x128xbf16, #tpu.memory_space<vmem>>, vector<1x16x128xbf16>,
    } else {
    }
    return
  }
  func.func @transform_0(%arg0: i32, %arg1: i32, %arg2: i32) -> (i32, i32, i32) {
    %c0_i32 = arith.constant 0 : i32
    %c0_i32_0 = arith.constant 0 : i32
    return %arg0, %c0_i32, %arg2 : i32, i32, i32
  }
  func.func @transform_1(%arg0: i32, %arg1: i32, %arg2: i32) -> (i32, i32) {
    %c0_i32 = arith.constant 0 : i32
    return %arg2, %arg1 : i32, i32
  }
  func.func @transform_2(%arg0: i32, %arg1: i32, %arg2: i32) -> (i32, i32, i32) {
    %c0_i32 = arith.constant 0 : i32
    %c0_i32_0 = arith.constant 0 : i32
    return %arg0, %c0_i32, %arg1 : i32, i32, i32
  }
}

module attributes {stable_mosaic.version = 11 : i64} {
  func.func @_fused_conv_layer_kernel(%arg0: i32, %arg1: i32, %arg2: i32, %arg3: memref<1x32x1024xbf16, #tpu.memory_space<vmem>>, %arg4: memref<1024x128xbf16, #tpu.memory_space<vmem>>, %arg5: memref<1x128xf32, #tpu.memory_space<vmem>>, %arg6: memref<1x32x128xbf16, #tpu.memory_space<vmem>>, %arg7: memref<32x128xf32, #tpu.memory_space<vmem>>) attributes {dimension_semantics = [#tpu.dimension_semantics<parallel>, #tpu.dimension_semantics<parallel>, #tpu.dimension_semantics<arbitrary>], iteration_bounds = array<i64: 2, 1, 1>, scalar_prefetch = 0 : i64, scratch_operands = 1 : i64, tpu.core_type = #tpu.core_type<tc>, window_params = [{transform_indices = @transform_0, window_bounds = array<i64: 1, 32, 1024>}, {transform_indices = @transform_1, window_bounds = array<i64: 1024, 128>}, {transform_indices = @transform_2, window_bounds = array<i64: 1, 128>}, {transform_indices = @transform_3, window_bounds = array<i64: 1, 32, 128>}]} {
    %c0_i32 = arith.constant 0 : i32
    %0 = arith.cmpi eq, %arg2, %c0_i32 : i32
    %1 = arith.extui %0 : i1 to i32
    %c0_i32_0 = arith.constant 0 : i32
    %2 = arith.cmpi ne, %1, %c0_i32_0 : i32
    scf.if %2 {
      %cst_11 = arith.constant 0.000000e+00 : f32
      %13 = vector.broadcast %cst_11 : f32 to vector<32x128xf32>
      %c0_12 = arith.constant 0 : index
      %c0_13 = arith.constant 0 : index
      %14 = vector.load %arg7[%c0_12, %c0_13] : memref<32x128xf32, #tpu.memory_space<vmem>>, vector<32x128xf32>
      tpu.vector_store %arg7[%c0_12, %c0_13], %13 {strides = array<i32>} : memref<32x128xf32, #tpu.memory_space<vmem>>, vector<32x128xf32>,
    } else {
    }
    %c0 = arith.constant 0 : index
    %c0_1 = arith.constant 0 : index
    %3 = vector.load %arg7[%c0, %c0_1] : memref<32x128xf32, #tpu.memory_space<vmem>>, vector<32x128xf32>
    %c0_2 = arith.constant 0 : index
    %c0_3 = arith.constant 0 : index
    %c0_4 = arith.constant 0 : index
    %4 = vector.load %arg3[%c0_2, %c0_3, %c0_4] : memref<1x32x1024xbf16, #tpu.memory_space<vmem>>, vector<1x32x1024xbf16>
    %5 = vector.shape_cast %4 : vector<1x32x1024xbf16> to vector<32x1024xbf16>
    %c0_5 = arith.constant 0 : index
    %c0_6 = arith.constant 0 : index
    %6 = vector.load %arg4[%c0_5, %c0_6] : memref<1024x128xbf16, #tpu.memory_space<vmem>>, vector<1024x128xbf16>
    %cst = arith.constant dense<0.000000e+00> : vector<32x128xf32>
    %7 = tpu.matmul %5, %6, %cst {dimension_numbers = #tpu.dot_dimension_numbers<[1], [0], [0], [1], [0, 0, 1, 1], [], []>} : vector<32x1024xbf16>, vector<1024x128xbf16>, vector<32x128xf32> -> vector<32x128xf32>
    %8 = arith.addf %3, %7 : vector<32x128xf32>
    %c0_7 = arith.constant 0 : index
    %c0_8 = arith.constant 0 : index
    %9 = vector.load %arg7[%c0_7, %c0_8] : memref<32x128xf32, #tpu.memory_space<vmem>>, vector<32x128xf32>
    tpu.vector_store %arg7[%c0_7, %c0_8], %8 {strides = array<i32>} : memref<32x128xf32, #tpu.memory_space<vmem>>, vector<32x128xf32>,
    %c0_i32_9 = arith.constant 0 : i32
    %10 = arith.cmpi eq, %arg2, %c0_i32_9 : i32
    %11 = arith.extui %10 : i1 to i32
    %c0_i32_10 = arith.constant 0 : i32
    %12 = arith.cmpi ne, %11, %c0_i32_10 : i32
    scf.if %12 {
      %c0_11 = arith.constant 0 : index
      %c0_12 = arith.constant 0 : index
      %13 = vector.load %arg7[%c0_11, %c0_12] : memref<32x128xf32, #tpu.memory_space<vmem>>, vector<32x128xf32>
      %c0_13 = arith.constant 0 : index
      %c0_14 = arith.constant 0 : index
      %14 = vector.load %arg5[%c0_13, %c0_14] : memref<1x128xf32, #tpu.memory_space<vmem>>, vector<1x128xf32>
      %15 = vector.broadcast %14 : vector<1x128xf32> to vector<32x128xf32>
      %16 = arith.addf %13, %15 : vector<32x128xf32>
      %17 = arith.truncf %16 : vector<32x128xf32> to vector<32x128xbf16>
      %c0_15 = arith.constant 0 : index
      %c0_16 = arith.constant 0 : index
      %c0_17 = arith.constant 0 : index
      %18 = vector.load %arg6[%c0_15, %c0_16, %c0_17] : memref<1x32x128xbf16, #tpu.memory_space<vmem>>, vector<1x32x128xbf16>
      %19 = vector.shape_cast %18 : vector<1x32x128xbf16> to vector<32x128xbf16>
      %20 = vector.shape_cast %17 : vector<32x128xbf16> to vector<1x32x128xbf16>
      tpu.vector_store %arg6[%c0_15, %c0_16, %c0_17], %20 {strides = array<i32>} : memref<1x32x128xbf16, #tpu.memory_space<vmem>>, vector<1x32x128xbf16>,
    } else {
    }
    return
  }
  func.func @transform_0(%arg0: i32, %arg1: i32, %arg2: i32) -> (i32, i32, i32) {
    %c0_i32 = arith.constant 0 : i32
    %c0_i32_0 = arith.constant 0 : i32
    return %arg0, %c0_i32, %arg2 : i32, i32, i32
  }
  func.func @transform_1(%arg0: i32, %arg1: i32, %arg2: i32) -> (i32, i32) {
    %c0_i32 = arith.constant 0 : i32
    return %arg2, %arg1 : i32, i32
  }
  func.func @transform_2(%arg0: i32, %arg1: i32, %arg2: i32) -> (i32, i32) {
    %c0_i32 = arith.constant 0 : i32
    %c0_i32_0 = arith.constant 0 : i32
    return %c0_i32, %arg1 : i32, i32
  }
  func.func @transform_3(%arg0: i32, %arg1: i32, %arg2: i32) -> (i32, i32, i32) {
    %c0_i32 = arith.constant 0 : i32
    %c0_i32_0 = arith.constant 0 : i32
    return %arg0, %c0_i32, %arg1 : i32, i32, i32
  }
}

</mosaic_0001>

<bundles_post_ra>
// kernel: _lambda_.5
= control target key start
LH: loop header
LB: loop body
LE: loop exit
PB: predicated region body
PF: predicated region fallthrough
CT: control target
= control target key end

     0   :  { %8 = vsyncpa [#allocation4], 0  ;;  %s1496_s0 = inlined_call_operand.hbm [shape: bf16[2,96,128], index: 0, kind: input, shape index: {}]   ;;  %s1497_s1 = inlined_call_operand.hbm [shape: bf16[128,128], index: 1, kind: input, shape index: {}]   ;;  %s1498_s2 = inlined_call_operand.hbm [shape: f32[1,128], index: 2, kind: input, shape index: {}]   ;;  %s1499_s3 = inlined_call_operand.hbm [shape: bf16[2,96,128], index: 3, kind: output, shape index: {}]  }
   0x1   :  { %10 = vsyncpa [#allocation4 + $0x1], 0 }
   0x2   :  { %11 = vsyncpa [#allocation7], 0 }
   0x3   :  { %12 = vsyncpa [#allocation5], 0 }
   0x4   :  { %14 = vsyncpa [#allocation5 + $0x1], 0  ;;  %s1215_s12 = smov 0   ;;  %s1217_s13 = smov 0  }
   0x5   :  { %s1219_s14 = smov 0   ;;  %s1221_s15 = smov 0  }
   0x6   :  { %s1223_s16 = smov 0   ;;  %s1225_s17 = smov 0  }
   0x7 LB: > { %s763_s18 = sadd.s32 4294967295, %s1185_s17   ;;  %s764_s19 = sadd.s32 4294967294, %s1185_s17   ;;  %s1185_s17 = sphi %s1225_s17, %s20_s17   ;;  %s1181_s16 = sphi %s1223_s16, %s1521_s16   ;;  %s1177_s15 = sphi %s1221_s15, %s1520_s15   ;;  %s1173_s14 = sphi %s1219_s14, %s1519_s14   ;;  %s1169_s13 = sphi %s1217_s13, %s1518_s13   ;;  %s1165_s12 = sphi %s1215_s12, %s1517_s12  }
   0x8   : > { %p61_p0 = scmp.ne.s32.totalorder %s1169_s13, %s1165_s12  ;;  %p1249_p1 = scmp.eq.s32.totalorder %s763_s18, 0 }
   0x9   : > { %p1253_p2 = scmp.eq.s32.totalorder %s763_s18, 1  ;;  %p147_p3 = scmp.eq.s32.totalorder %s764_s19, 1 }
   0xa   : > { %s1504_s20 = scalar_select %p1249_p1, 1, 0 }
   0xb   : > { %p1259_p4 = por %p1249_p1, %p61_p0  ;;  %p765_p5 = scmp.ge.s32.totalorder %s1185_s17, 1 }
   0xc   : > { %p1264_p6 = por %p147_p3, %p61_p0  ;;  %p154_p7 = scmp.lt.s32.totalorder %s1185_s17, 3 }
   0xd   : > { %s1506_s22 = scalar_select %p1259_p4, 1, 0 }
   0xe   : > { %s1507_s23 = scalar_select %p1264_p6, 1, 0 }
   0xf   : > { %p1269_p8 = pnand %p765_p5, %p154_p7  ;;  %s1187_s25 = smov [#allocation6]  }
  0x10   : > { %s170_s26 = sshll.u32 %s1187_s25, 4  ;;  %s1188_s28 = smov [#allocation8]   ;;  %s1273_s26 = int_to_ptr.vmem [resolvable:$true] %s170_s26 }
  0x11   : > { %p924_p9 = pneg %p1269_p8  ;;  %s186_s29 = sshll.u32 %s1188_s28, 4  ;;  %s1284_s29 = int_to_ptr.vmem [resolvable:$true] %s186_s29 }
  0x12   : > { %s1013_s5 = scalar_lea.hbm %s1497_s1, 1024 }
  0x13   : > { %p1280_p11 = pnand %p924_p9, %p1249_p1  ;;  %p1014_p12 = scmp.ne.s32.totalorder %s1497_s1, %s1013_s5 }
  0x14   : > { %p1020_p5 = scmp.lt.u32.totalorder %s1013_s5, %s1497_s1 }
  0x15   : > { %p1015_p13 = pneg %p1280_p11 }
  0x17   : > { %p1016_p0 = pnand %p1015_p13, %p1014_p12 }
  0x19   : > { %p1017_p3 = pneg %p1016_p0 }
  0x1b   : > { %p1022_p7 = pnand %p1020_p5, %p1017_p3 }
  0x1d   : > { %1025 = shalt.err (!%p1022_p7)
}
  0x1e   : > { %s1026_s10 = scalar_lea.vmem %s1273_s26, 1024  ;;  %p1034_p1 = scmp.lt.s32.totalorder %s1273_s26, %s1273_s26 }
  0x1f   : > { %p1027_p9 = scmp.ne.s32.totalorder %s1273_s26, %s1026_s10  ;;  %p1035_p12 = scmp.lt.s32.totalorder %s1026_s10, %s1026_s10 }
  0x21   : > { %p1029_p10 = pnand %p1027_p9, %p1015_p13  ;;  %p1036_p0 = por %p1035_p12, %p1034_p1 }
  0x23   : > { %p1030_p6 = pneg %p1029_p10 }
  0x25   : > { %p1037_p4 = pnand %p1036_p0, %p1030_p6 }
  0x27   : > { %1040 = shalt.err (!%p1037_p4)
}
  0x28   : > { %s1189_s11 = smov 64   ;;  %s1190_s18 = smov 4  }
  0x29   : > { %927 = dma.hbm_to_vmem [thread:$0]  (!%p1280_p11), %s1497_s1, 1024, %s1273_s26, [#allocation7], %s1189_s11, %s1189_s11, %s1190_s18  }
  0x2a   : > { %s1041_s4 = scalar_lea.hbm %s1498_s2, 16 }
  0x2b   : > { %p1042_p1 = scmp.ne.s32.totalorder %s1498_s2, %s1041_s4  ;;  %p1048_p10 = scmp.lt.u32.totalorder %s1041_s4, %s1498_s2 }
  0x2d   : > { %p1044_p4 = pnand %p1042_p1, %p1015_p13 }
  0x2f   : > { %p1045_p6 = pneg %p1044_p4 }
  0x31   : > { %p1050_p3 = pnand %p1048_p10, %p1045_p6 }
  0x33   : > { %1053 = shalt.err (!%p1050_p3)
}
  0x34   : > { %s1054_s26 = scalar_lea.vmem %s1284_s29, 16  ;;  %s1061_s9 = scalar_lea.vmem %s1284_s29, 32 }
  0x35   : > { %p1055_p5 = scmp.ne.s32.totalorder %s1284_s29, %s1054_s26  ;;  %p1062_p12 = scmp.lt.s32.totalorder %s1284_s29, %s1284_s29 }
  0x36   : > { %p1063_p0 = scmp.lt.s32.totalorder %s1061_s9, %s1054_s26 }
  0x37   : > { %p1057_p7 = pnand %p1055_p5, %p1015_p13 }
  0x38   : > { %p1064_p1 = por %p1063_p0, %p1062_p12 }
  0x39   : > { %p1058_p9 = pneg %p1057_p7 }
  0x3b   : > { %p1065_p4 = pnand %p1064_p1, %p1058_p9 }
  0x3d   : > { %1068 = shalt.err (!%p1065_p4)
}
  0x3e   : > { %930 = dma.hbm_to_vmem [thread:$0]  (!%p1280_p11), %s1498_s2, 16, %s1284_s29, [#allocation7]  }
  0x3f   : > { %s39_s25 = sadd.s32 1, %s1181_s16  ;;  %s48_s28 = sadd.s32 1, %s1173_s14 }
  0x40   : > { %p41_p13 = scmp.ge.s32.totalorder %s39_s25, 2  ;;  %p55_p6 = scmp.ne.s32.totalorder %s1173_s14, %s1169_s13 }
  0x41   : > { %p56_p10 = scmp.eq.s32.totalorder %s1185_s17, 0  ;;  %p941_p3 = scmp.lt.s32.totalorder %s1185_s17, 2 }
  0x42   : > { %s1523_s25 = smov (%p41_p13, %s39_s25), 0  ;;  %p1352_p7 = por %p1253_p2, %p55_p6 }
  0x43   : > { %p57_p5 = por %p56_p10, %p55_p6  ;;  %s43_s30 = ssub.s32 %s1181_s16, %s1523_s25 }
  0x44   : > { %s1510_s27 = scalar_select %p1352_p7, 1, 0 }
  0x45   : > { %s197_s4 = sand.u32 1, %s1173_s14   ;;  %p46_p9 = scmp.eq.s32.totalorder %s43_s30, 0 }
  0x46   : > { %s908_s29 = smul.u32 48, %s197_s4  ;;  %p1359_p11 = pnand %p941_p3, %p57_p5 }
  0x47   : > { %s1364_s6 = scalar_select %p46_p9, %s1173_s14, %s48_s28  }
  0x48   : > { %s909_s7 = smul.u32 768, %s1181_s16  ;;  %s201_s8 = scalar_lea.vmem [#allocation3], %s908_s29 }
  0x49   : > { %s209_s26 = sshll.u32 %s201_s8, 4  ;;  %s1374_s19 = scalar_lea.sflag [#allocation4], %s197_s4  ;;  %s1372_s26 = int_to_ptr.vmem [resolvable:$true] %s209_s26 }
  0x4a   : > { %s1370_s10 = scalar_lea.hbm %s1496_s0, %s909_s7  ;;  %p1071_p12 = pneg %p1359_p11 }
  0x4b   : > { %s1069_s30 = scalar_lea.hbm %s1370_s10, 768  ;;  %s1074_s7 = scalar_lea.hbm %s1496_s0, 1536 }
  0x4c   : > { %p1070_p2 = scmp.ne.s32.totalorder %s1370_s10, %s1069_s30  ;;  %p1075_p4 = scmp.lt.u32.totalorder %s1370_s10, %s1496_s0 }
  0x4d   : > { %p1076_p13 = scmp.lt.u32.totalorder %s1074_s7, %s1069_s30  ;;  %p1078_p10 = scmp.lt.u32.totalorder %s1069_s30, %s1370_s10 }
  0x4e   : > { %p1072_p0 = pnand %p1071_p12, %p1070_p2 }
  0x4f   : > { %p1077_p6 = por %p1076_p13, %p1075_p4 }
  0x50   : > { %p1073_p1 = pneg %p1072_p0 }
  0x51   : > { %p1079_p3 = por %p1078_p10, %p1077_p6 }
  0x53   : > { %p1080_p5 = pnand %p1079_p3, %p1073_p1 }
  0x55   : > { %1083 = shalt.err (!%p1080_p5)
}
  0x56   : > { %s1084_s4 = scalar_lea.vmem %s1372_s26, 768  ;;  %s1191_s9 = smov [#allocation3]  }
  0x57   : > { %p1085_p9 = scmp.ne.s32.totalorder %s1372_s26, %s1084_s4  ;;  %s1089_s28 = sshll.u32 %s1191_s9, 4  ;;  %s1090_s28 = int_to_ptr.vmem [resolvable:$false] %s1089_s28 }
  0x58   : > { %s1091_s29 = scalar_lea.vmem %s1090_s28, 1536  ;;  %p1092_p7 = scmp.lt.s32.totalorder %s1372_s26, %s1090_s28 }
  0x59   : > { %p1087_p2 = pnand %p1085_p9, %p1071_p12  ;;  %p1093_p4 = scmp.lt.s32.totalorder %s1091_s29, %s1084_s4 }
  0x5b   : > { %p1088_p0 = pneg %p1087_p2  ;;  %p1094_p13 = por %p1093_p4, %p1092_p7 }
  0x5d   : > { %p1095_p6 = pnand %p1094_p13, %p1088_p0 }
  0x5f   : > { %1098 = shalt.err (!%p1095_p6)
}
  0x60   : > { %934 = dma.hbm_to_vmem [thread:$0]  (!%p1359_p11), %s1370_s10, 768, %s1372_s26, %s1374_s19, %s1189_s11, %s1189_s11, %s1190_s18  }
  0x61   : > { %221 = sbr.rel (%p1269_p8) target bundleno = 387 (0x183), region = 32  ;;  %s1408_s30 = sand.u32 (!%p1269_p8), 1, %s1169_s13  }
  0x62   : > { %s910_s7 = smul.u32 (!%p1269_p8), 48, %s1408_s30  ;;  %s224_s8 = scalar_lea.sflag (!%p1269_p8), [#allocation4], %s1408_s30 }
  0x63   : > { %p1512_p7 = scmp.ne.s32.totalorder (!%p1269_p8), %s1506_s22, 0 }
  0x64   : > { %s1414_s5 = scalar_lea.vmem (!%p1269_p8), [#allocation3], %s910_s7 }
  0x68   : > { %1152 = dma.done.wait (%p1512_p7), %s224_s8, 768  }
  0x69   : > { %1154 = vsyncadd (%p1512_p7), %s224_s8, 4294966528  ;;  %p1513_p11 = scmp.ne.s32.totalorder %s1504_s20, 0 }
  0x6b   : > { %1156 = dma.done.wait (%p1513_p11), [#allocation7], 1040  }
  0x6c   : > { %1158 = vsyncadd (%p1513_p11), [#allocation7], 4294966256  ;;  %v999_v0 = vld [vmem:[#allocation6] sm:$0xff]   ;;  %v1000_v1 = vld [vmem:[#allocation6 + $0x8] sm:$0xff]   ;;  %s1432_s20 = scalar_lea.vmem [#allocation9], %s910_s7  ;;  %s911_s24 = smul.u32 768, %s1177_s15 }
  0x6d   : > { %892 = vmatprep.subr.bf16.mxu1 %v999_v0  ;;  %864 = vmatprep.subr.bf16.mxu0 %v999_v0  ;;  %v1001_v2 = vld [vmem:[#allocation6 + $0x10] sm:$0xff]   ;;  %v1002_v3 = vld [vmem:[#allocation6 + $0x18] sm:$0xff]   ;;  %v1003_v6 = vld [vmem:[#allocation6 + $0x20] sm:$0xff]   ;;  %s650_s22 = sshll.u32 %s1432_s20, 4  ;;  %s636_s15 = scalar_lea.sflag [#allocation5], %s1408_s30  ;;  %s1440_s22 = int_to_ptr.vmem [resolvable:$true] %s650_s22 }
  0x6e   : > { %900 = vmatpush3.bf16.msra.mxu1 %v999_v0  ;;  %865 = vmatpush3.bf16.msra.mxu0 %v999_v0  ;;  %v1007_v4 = vld [vmem:[%s1414_s5 + $0x10] sm:$0xff]   ;;  %v1009_v5 = vld [vmem:[%s1414_s5] sm:$0xff]   ;;  %v1004_v7 = vld [vmem:[#allocation6 + $0x28] sm:$0xff]   ;;  %s1445_s26 = scalar_lea.hbm %s1499_s3, %s911_s24  ;;  %s1099_s10 = scalar_lea.vmem %s1440_s22, 768 }
  0x6f   : > { %893 = vmatprep.subr.bf16.mxu1 %v1000_v1  ;;  %866 = vmatprep.subr.bf16.mxu0 %v1000_v1  ;;  %v1005_v8 = vld [vmem:[#allocation6 + $0x30] sm:$0xff]   ;;  %v1006_v9 = vld [vmem:[#allocation6 + $0x38] sm:$0xff]   ;;  %v787_v14 = vld [vmem:[#allocation8] ss:$0 sm:$0xff]  ;;  %p1100_p8 = scmp.ne.s32.totalorder %s1440_s22, %s1099_s10  ;;  %p1514_p12 = scmp.ne.s32.totalorder %s1510_s27, 0 }
  0x70   : > { %884 = vmatprep.mubr.bf16.mxu1 %v1007_v4  ;;  %880 = vmatprep.mubr.bf16.mxu0 %v1009_v5  ;;  %v1008_v10 = vld [vmem:[%s1414_s5 + $0x18] sm:$0xff]   ;;  %v1010_v11 = vld [vmem:[%s1414_s5 + $0x8] sm:$0xff]   ;;  %v1011_v12 = vld [vmem:[%s1414_s5 + $0x20] sm:$0xff]   ;;  %s1192_s19 = smov [#allocation9]  }
  0x71   : > { %v1012_v13 = vld [vmem:[%s1414_s5 + $0x28] sm:$0xff]   ;;  %p1101_p1 = pnand %p1100_p8, %p1514_p12  ;;  %s1103_s21 = sshll.u32 %s1192_s19, 4  ;;  %s1104_s21 = int_to_ptr.vmem [resolvable:$false] %s1103_s21 }
  0x72   : > { %901 = vmatpush3.bf16.msra.mxu1 %v1000_v1  ;;  %867 = vmatpush3.bf16.msra.mxu0 %v1000_v1  ;;  %s1105_s4 = scalar_lea.vmem %s1104_s21, 1536  ;;  %p1106_p3 = scmp.lt.s32.totalorder %s1440_s22, %s1104_s21 }
  0x73   : > { %894 = vmatprep.subr.bf16.mxu1 %v1001_v2  ;;  %868 = vmatprep.subr.bf16.mxu0 %v1001_v2  ;;  %p1102_p10 = pneg %p1101_p1  ;;  %p1107_p5 = scmp.lt.s32.totalorder %s1105_s4, %s1099_s10 }
  0x75   : > { %p1108_p9 = por %p1107_p5, %p1106_p3 }
  0x76   : > { %902 = vmatpush3.bf16.msra.mxu1 %v1001_v2  ;;  %869 = vmatpush3.bf16.msra.mxu0 %v1001_v2 }
  0x77   : > { %895 = vmatprep.subr.bf16.mxu1 %v1002_v3  ;;  %870 = vmatprep.subr.bf16.mxu0 %v1002_v3  ;;  %p1109_p2 = pnand %p1108_p9, %p1102_p10 }
  0x7a   : > { %903 = vmatpush3.bf16.msra.mxu1 %v1002_v3  ;;  %871 = vmatpush3.bf16.msra.mxu0 %v1002_v3 }
  0x7b   : > { %896 = vmatprep.subr.bf16.mxu1 %v1003_v6  ;;  %872 = vmatprep.subr.bf16.mxu0 %v1003_v6 }
  0x7e   : > { %904 = vmatpush3.bf16.msra.mxu1 %v1003_v6  ;;  %873 = vmatpush3.bf16.msra.mxu0 %v1003_v6 }
  0x7f   : > { %897 = vmatprep.subr.bf16.mxu1 %v1004_v7  ;;  %874 = vmatprep.subr.bf16.mxu0 %v1004_v7 }
  0x82   : > { %905 = vmatpush3.bf16.msra.mxu1 %v1004_v7  ;;  %875 = vmatpush3.bf16.msra.mxu0 %v1004_v7 }
  0x83   : > { %898 = vmatprep.subr.bf16.mxu1 %v1005_v8  ;;  %876 = vmatprep.subr.bf16.mxu0 %v1005_v8 }
  0x86   : > { %906 = vmatpush3.bf16.msra.mxu1 %v1005_v8  ;;  %877 = vmatpush3.bf16.msra.mxu0 %v1005_v8 }
  0x87   : > { %899 = vmatprep.subr.bf16.mxu1 %v1006_v9  ;;  %878 = vmatprep.subr.bf16.mxu0 %v1006_v9 }
  0x8a   : > { %907 = vmatpush3.bf16.msra.mxu1 %v1006_v9  ;;  %879 = vmatpush3.bf16.msra.mxu0 %v1006_v9 }
  0x8d   : > { %885 = vmatmul.mubr.bf16.vlgmr.msra.gmra.mrb[0].mxu1 %v1008_v10  ;;  %881 = vmatmul.mubr.bf16.vlgmr.msra.gmra.mrb[0].mxu0 %v1010_v11 }
  0x8e   : > { %888 = vmatprep.mubr.bf16.mxu1 %v1011_v12 }
  0x95   : > { %889 = vmatmul.mubr.bf16.gmra.mrb[4].mxu1 %v1012_v13 }
 0x160   : > { %v886_v15 = vpop.f32.mrb[0].mxu1  ;;  %v882_v16 = vpop.f32.mrb[0].mxu0 }
 0x161   : > { %v533_v17 = vadd.f32 %v886_v15, %v787_v14  ;;  %v450_v18 = vpop.f32.mrb[1].mxu1  ;;  %v529_v19 = vadd.f32 %v882_v16, %v787_v14  ;;  %v434_v20 = vpop.f32.mrb[1].mxu0 }
 0x162   : > { %v531_v21 = vadd.f32 %v787_v14, %v450_v18  ;;  %v887_v22 = vpop.f32.mrb[2].mxu1  ;;  %v527_v23 = vadd.f32 %v787_v14, %v434_v20  ;;  %v883_v24 = vpop.f32.mrb[2].mxu0 }
 0x163   : > { %vm545_vm0 = vcmp.ge.f32.partialorder %v533_v17, 0.0  ;;  %v557_v25 = vmul.f32 0.2, %v533_v17  ;;  %v534_v26 = vadd.f32 %v887_v22, %v787_v14  ;;  %v453_v27 = vpop.f32.mrb[3].mxu1  ;;  %v437_v28 = vpop.f32.mrb[3].mxu0  ;;  %vm541_vm3 = vcmp.ge.f32.partialorder %v529_v19, 0.0 }
 0x164   : > { %v555_v29 = vmul.f32 0.2, %v531_v21  ;;  %v553_v30 = vmul.f32 0.2, %v529_v19  ;;  %v532_v31 = vadd.f32 %v787_v14, %v453_v27  ;;  %vm543_vm1 = vcmp.ge.f32.partialorder %v531_v21, 0.0 }
 0x165   : > { %vm546_vm2 = vcmp.ge.f32.partialorder %v534_v26, 0.0  ;;  %v558_v32 = vmul.f32 0.2, %v534_v26  ;;  %v569_v33 = vsel %vm545_vm0, %v533_v17, %v557_v25  ;;  %vm539_vm5 = vcmp.ge.f32.partialorder %v527_v23, 0.0 }
 0x166   : > { %vm544_vm4 = vcmp.ge.f32.partialorder %v532_v31, 0.0  ;;  %v556_v34 = vmul.f32 0.2, %v532_v31  ;;  %v551_v36 = vmul.f32 0.2, %v527_v23  ;;  %v530_v37 = vadd.f32 %v883_v24, %v787_v14 }
 0x167   : > { %v570_v35 = vsel %vm546_vm2, %v534_v26, %v558_v32  ;;  %v528_v38 = vadd.f32 %v787_v14, %v437_v28  ;;  %v567_v39 = vsel %vm543_vm1, %v531_v21, %v555_v29  ;;  %v565_v41 = vsel %vm541_vm3, %v529_v19, %v553_v30 }
 0x168   : > { %v833_v40 = vpack.c.bf16 %v570_v35, %v569_v33  ;;  %v568_v42 = vsel %vm544_vm4, %v532_v31, %v556_v34  ;;  %v890_v43 = vpop.f32.mrb[4].mxu1  ;;  %v563_v45 = vsel %vm539_vm5, %v527_v23, %v551_v36  ;;  %vm542_vm6 = vcmp.ge.f32.partialorder %v530_v37, 0.0 }
 0x169   : > { %v828_v44 = vpack.c.bf16 %v568_v42, %v567_v39  ;;  %v554_v46 = vmul.f32 0.2, %v530_v37  ;;  %v466_v47 = vpop.f32.mrb[5].mxu1  ;;  %vm540_vm7 = vcmp.ge.f32.partialorder %v528_v38, 0.0  ;;  %v552_v48 = vmul.f32 0.2, %v528_v38 }
 0x16a   : > { %847 = vst [vmem:[%s1432_s20 + $0x18] sm:$0xff] %v833_v40   ;;  %v537_v49 = vadd.f32 %v890_v43, %v787_v14  ;;  %v535_v50 = vadd.f32 %v787_v14, %v466_v47  ;;  %v891_v51 = vpop.f32.mrb[6].mxu1 }
 0x16b   : > { %846 = vst [vmem:[%s1432_s20 + $0x10] sm:$0xff] %v828_v44   ;;  %v566_v52 = vsel %vm542_vm6, %v530_v37, %v554_v46  ;;  %v538_v53 = vadd.f32 %v891_v51, %v787_v14  ;;  %v469_v54 = vpop.f32.mrb[7].mxu1  ;;  %v564_v56 = vsel %vm540_vm7, %v528_v38, %v552_v48 }
 0x16c   : > { %v823_v55 = vpack.c.bf16 %v566_v52, %v565_v41  ;;  %v561_v57 = vmul.f32 0.2, %v537_v49  ;;  %v818_v58 = vpack.c.bf16 %v564_v56, %v563_v45  ;;  %vm549_vm8 = vcmp.ge.f32.partialorder %v537_v49, 0.0 }
 0x16d   : > { %vm550_vm9 = vcmp.ge.f32.partialorder %v538_v53, 0.0  ;;  %v559_v59 = vmul.f32 0.2, %v535_v50  ;;  %v562_v60 = vmul.f32 0.2, %v538_v53  ;;  %v536_v61 = vadd.f32 %v787_v14, %v469_v54 }
 0x16e   : > { %845 = vst [vmem:[%s1432_s20 + $0x8] sm:$0xff] %v823_v55   ;;  %819 = vst [vmem:[%s1432_s20] sm:$0xff] %v818_v58   ;;  %vm547_vm10 = vcmp.ge.f32.partialorder %v535_v50, 0.0  ;;  %v573_v62 = vsel %vm549_vm8, %v537_v49, %v561_v57 }
 0x16f   : > { %v574_v63 = vsel %vm550_vm9, %v538_v53, %v562_v60  ;;  %vm548_vm11 = vcmp.ge.f32.partialorder %v536_v61, 0.0  ;;  %v560_v0 = vmul.f32 0.2, %v536_v61  ;;  %v571_v2 = vsel %vm547_vm10, %v535_v50, %v559_v59 }
 0x170   : > { %v843_v1 = vpack.c.bf16 %v574_v63, %v573_v62 }
 0x171   : > { %v572_v3 = vsel %vm548_vm11, %v536_v61, %v560_v0 }
 0x172   : > { %849 = vst [vmem:[%s1432_s20 + $0x28] sm:$0xff] %v843_v1   ;;  %v838_v4 = vpack.c.bf16 %v572_v3, %v571_v2 }
 0x174   : > { %848 = vst [vmem:[%s1432_s20 + $0x20] sm:$0xff] %v838_v4  }
 0x175   : > { %1112 = shalt.err (!%p1109_p2)
}
 0x176   : > { %s1113_s9 = scalar_lea.hbm %s1445_s26, 768  ;;  %s1117_s7 = scalar_lea.hbm %s1499_s3, 1536 }
 0x177   : > { %p1114_p0 = scmp.ne.s32.totalorder %s1445_s26, %s1113_s9  ;;  %p1118_p6 = scmp.lt.u32.totalorder %s1445_s26, %s1499_s3 }
 0x178   : > { %p1119_p7 = scmp.lt.u32.totalorder %s1117_s7, %s1113_s9  ;;  %p1121_p8 = scmp.lt.u32.totalorder %s1113_s9, %s1445_s26 }
 0x179   : > { %p1115_p4 = pnand %p1114_p0, %p1514_p12 }
 0x17a   : > { %p1120_p11 = por %p1119_p7, %p1118_p6 }
 0x17b   : > { %p1116_p13 = pneg %p1115_p4 }
 0x17c   : > { %p1122_p1 = por %p1121_p8, %p1120_p11 }
 0x17e   : > { %p1123_p10 = pnand %p1122_p1, %p1116_p13 }
 0x180   : > { %1126 = shalt.err (!%p1123_p10)
}
 0x181   : > { %s1193_s20 = smov 64   ;;  %s1194_s24 = smov 4  }
 0x182   : > { %922 = dma.vmem_to_hbm [thread:$0]  (%p1514_p12), %s1440_s22, 768, %s1445_s26, %s636_s15, %s1193_s20, %s1193_s20, %s1194_s24  }
 0x183 PF: > { %s665_s11 = sand.u32 1, %s1165_s12   ;;  %p1515_p3 = scmp.ne.s32.totalorder %s1507_s23, 0 }
 0x184   : > { %p1516_p5 = scmp.ge.s32.totalorder %s1185_s17, 2  ;;  %s666_s18 = scalar_lea.sflag [#allocation5], %s665_s11 }
 0x186   : > { %p936_p9 = pnand %p1516_p5, %p1515_p3 }
 0x188   : > { %1160 = dma.done.wait (!%p936_p9), %s666_s18, 768  }
 0x189   : > { %1162 = vsyncadd (!%p936_p9), %s666_s18, 4294966528  ;;  %s20_s17 = sadd.s32 1, %s1185_s17   ;;  %s1517_s12 = smov %s1169_s13 }
 0x18a   : > { %p17_p2 = scmp.ge.s32.totalorder %s20_s17, 4   ;;  %s1518_s13 = smov %s1173_s14 }
 0x18b   : > { %s1519_s14 = smov %s1364_s6  ;;  %s1520_s15 = smov %s1181_s16 }
 0x18c   : > { %s1521_s16 = smov %s1523_s25  ;;  %19 = sbr.rel (!%p17_p2) target bundleno = 7 (0x7), region = 95 }
 0x193   :  { %671 = vsyncpa [#allocation4], 1 }
 0x194   :  { %673 = vsyncpa [#allocation4 + $0x1], 1 }
 0x195   :  { %674 = vsyncpa [#allocation7], 1 }
 0x196   :  { %675 = vsyncpa [#allocation5], 1 }
 0x197   :  { %677 = vsyncpa [#allocation5 + $0x1], 1 }

// kernel: _lambda_.6
= control target key start
LH: loop header
LB: loop body
LE: loop exit
PB: predicated region body
PF: predicated region fallthrough
CT: control target
= control target key end

     0   :  { %7 = vsyncpa [#allocation4], 0  ;;  %s1136_s0 = inlined_call_operand.hbm [shape: bf16[2,32,128], index: 0, kind: input, shape index: {}]   ;;  %s1137_s1 = inlined_call_operand.hbm [shape: bf16[128,128], index: 1, kind: input, shape index: {}]   ;;  %s1138_s2 = inlined_call_operand.hbm [shape: bf16[2,32,128], index: 2, kind: output, shape index: {}]  }
   0x1   :  { %9 = vsyncpa [#allocation4 + $0x1], 0 }
   0x2   :  { %10 = vsyncpa [#allocation7], 0 }
   0x3   :  { %11 = vsyncpa [#allocation5], 0 }
   0x4   :  { %13 = vsyncpa [#allocation5 + $0x1], 0  ;;  %s905_s9 = smov 0   ;;  %s907_s10 = smov 0  }
   0x5   :  { %s909_s11 = smov 0   ;;  %s911_s12 = smov 0  }
   0x6   :  { %s913_s13 = smov 0   ;;  %s915_s14 = smov 0  }
   0x7 LB: > { %s570_s15 = sadd.s32 4294967295, %s881_s14   ;;  %s571_s16 = sadd.s32 4294967294, %s881_s14   ;;  %s881_s14 = sphi %s915_s14, %s19_s14   ;;  %s877_s13 = sphi %s913_s13, %s1162_s13   ;;  %s873_s12 = sphi %s911_s12, %s1161_s12   ;;  %s869_s11 = sphi %s909_s11, %s1160_s11   ;;  %s865_s10 = sphi %s907_s10, %s1159_s10   ;;  %s861_s9 = sphi %s905_s9, %s1158_s9  }
   0x8   : > { %p60_p0 = scmp.ne.s32.totalorder %s865_s10, %s861_s9  ;;  %p939_p1 = scmp.eq.s32.totalorder %s570_s15, 0 }
   0x9   : > { %p943_p2 = scmp.eq.s32.totalorder %s570_s15, 1  ;;  %p120_p3 = scmp.eq.s32.totalorder %s571_s16, 1 }
   0xa   : > { %s1143_s17 = scalar_select %p939_p1, 1, 0 }
   0xb   : > { %s1144_s18 = scalar_select %p943_p2, 1, 0 }
   0xc   : > { %p949_p4 = por %p939_p1, %p60_p0  ;;  %p572_p5 = scmp.ge.s32.totalorder %s881_s14, 1 }
   0xd   : > { %p954_p6 = por %p120_p3, %p60_p0  ;;  %p127_p7 = scmp.lt.s32.totalorder %s881_s14, 3 }
   0xe   : > { %s1145_s19 = scalar_select %p949_p4, 1, 0 }
   0xf   : > { %s1146_s20 = scalar_select %p954_p6, 1, 0 }
  0x10   : > { %p959_p8 = pnand %p572_p5, %p127_p7  ;;  %s883_s22 = smov [#allocation6]  }
  0x11   : > { %s143_s23 = sshll.u32 %s883_s22, 4  ;;  %s38_s25 = sadd.s32 1, %s877_s13  ;;  %s144_s23 = int_to_ptr.vmem [resolvable:$true] %s143_s23 }
  0x12   : > { %s1147_s21 = scalar_select %p959_p8, 1, 0 }
  0x13   : > { %p656_p9 = pneg %p959_p8  ;;  %s737_s28 = scalar_lea.hbm %s1137_s1, 1024 }
  0x14   : > { %p738_p12 = scmp.ne.s32.totalorder %s1137_s1, %s737_s28  ;;  %p744_p5 = scmp.lt.u32.totalorder %s737_s28, %s1137_s1 }
  0x15   : > { %p968_p11 = pnand %p656_p9, %p939_p1 }
  0x17   : > { %p739_p13 = pneg %p968_p11 }
  0x19   : > { %p740_p0 = pnand %p739_p13, %p738_p12 }
  0x1b   : > { %p741_p3 = pneg %p740_p0 }
  0x1d   : > { %p746_p7 = pnand %p744_p5, %p741_p3 }
  0x1f   : > { %749 = shalt.err (!%p746_p7)
}
  0x20   : > { %s750_s5 = scalar_lea.vmem %s144_s23, 1024  ;;  %p758_p1 = scmp.lt.s32.totalorder %s144_s23, %s144_s23 }
  0x21   : > { %p751_p9 = scmp.ne.s32.totalorder %s144_s23, %s750_s5  ;;  %p759_p4 = scmp.lt.s32.totalorder %s750_s5, %s750_s5 }
  0x23   : > { %p753_p10 = pnand %p751_p9, %p739_p13  ;;  %p760_p8 = por %p759_p4, %p758_p1 }
  0x25   : > { %p754_p6 = pneg %p753_p10 }
  0x27   : > { %p761_p2 = pnand %p760_p8, %p754_p6 }
  0x29   : > { %764 = shalt.err (!%p761_p2)
}
  0x2a   : > { %s884_s6 = smov 64   ;;  %s885_s7 = smov 4  }
  0x2b   : > { %659 = dma.hbm_to_vmem [thread:$0]  (!%p968_p11), %s1137_s1, 1024, %s144_s23, [#allocation7], %s884_s6, %s884_s6, %s885_s7  }
  0x2c   : > { %p40_p1 = scmp.ge.s32.totalorder %s38_s25, 2  ;;  %s47_s16 = sadd.s32 1, %s869_s11 }
  0x2d   : > { %p54_p2 = scmp.ne.s32.totalorder %s869_s11, %s865_s10  ;;  %p55_p4 = scmp.eq.s32.totalorder %s881_s14, 0 }
  0x2e   : > { %s1164_s25 = smov (%p40_p1, %s38_s25), 0  ;;  %p1150_p8 = scmp.ne.s32.totalorder %s1144_s18, 0 }
  0x2f   : > { %p998_p6 = por %p55_p4, %p54_p2  ;;  %s42_s26 = ssub.s32 %s877_s13, %s1164_s25 }
  0x30   : > { %p1004_p10 = por %p1150_p8, %p54_p2  ;;  %p669_p12 = scmp.lt.s32.totalorder %s881_s14, 2 }
  0x31   : > { %p45_p11 = scmp.eq.s32.totalorder %s42_s26, 0  ;;  %s157_s23 = sand.u32 1, %s869_s11  }
  0x32   : > { %s575_s27 = sshll.u32 %s157_s23, 4  ;;  %s601_s29 = sshll.u32 %s877_s13, 8 }
  0x33   : > { %s1013_s28 = scalar_select %p45_p11, %s869_s11, %s47_s16  }
  0x34   : > { %s1019_s4 = scalar_lea.hbm %s1136_s0, %s601_s29  ;;  %s161_s18 = scalar_lea.vmem [#allocation3], %s575_s27 }
  0x35   : > { %s169_s5 = sshll.u32 %s161_s18, 4  ;;  %p1025_p13 = pnand %p669_p12, %p998_p6  ;;  %s1021_s5 = int_to_ptr.vmem [resolvable:$true] %s169_s5 }
  0x36   : > { %s1029_s15 = scalar_lea.sflag [#allocation4], %s157_s23  ;;  %s765_s16 = scalar_lea.hbm %s1019_s4, 256 }
  0x37   : > { %p766_p0 = scmp.ne.s32.totalorder %s1019_s4, %s765_s16  ;;  %p767_p3 = pneg %p1025_p13 }
  0x38   : > { %s770_s22 = scalar_lea.hbm %s1136_s0, 512  ;;  %p771_p9 = scmp.lt.u32.totalorder %s1019_s4, %s1136_s0 }
  0x39   : > { %p768_p5 = pnand %p767_p3, %p766_p0  ;;  %p772_p1 = scmp.lt.u32.totalorder %s770_s22, %s765_s16 }
  0x3a   : > { %p774_p4 = scmp.lt.u32.totalorder %s765_s16, %s1019_s4 }
  0x3b   : > { %p769_p7 = pneg %p768_p5  ;;  %p773_p2 = por %p772_p1, %p771_p9 }
  0x3d   : > { %p775_p6 = por %p774_p4, %p773_p2 }
  0x3f   : > { %p776_p8 = pnand %p775_p6, %p769_p7 }
  0x41   : > { %779 = shalt.err (!%p776_p8)
}
  0x42   : > { %s780_s23 = scalar_lea.vmem %s1021_s5, 256  ;;  %s886_s3 = smov [#allocation3]  }
  0x43   : > { %p781_p12 = scmp.ne.s32.totalorder %s1021_s5, %s780_s23  ;;  %s785_s18 = sshll.u32 %s886_s3, 4  ;;  %s786_s18 = int_to_ptr.vmem [resolvable:$false] %s785_s18 }
  0x44   : > { %s787_s26 = scalar_lea.vmem %s786_s18, 512  ;;  %p788_p5 = scmp.lt.s32.totalorder %s1021_s5, %s786_s18 }
  0x45   : > { %p783_p11 = pnand %p781_p12, %p767_p3  ;;  %p789_p9 = scmp.lt.s32.totalorder %s787_s26, %s780_s23 }
  0x47   : > { %p784_p0 = pneg %p783_p11  ;;  %p790_p1 = por %p789_p9, %p788_p5 }
  0x49   : > { %p791_p2 = pnand %p790_p1, %p784_p0 }
  0x4b   : > { %794 = shalt.err (!%p791_p2)
}
  0x4c   : > { %663 = dma.hbm_to_vmem [thread:$0]  (!%p1025_p13), %s1019_s4, 256, %s1021_s5, %s1029_s15, %s884_s6, %s884_s6, %s885_s7  }
  0x4d   : > { %p1153_p3 = scmp.ne.s32.totalorder %s1147_s21, 0 }
  0x4e   : > { %s1063_s16 = sand.u32 (!%p1153_p3), 1, %s865_s10   ;;  %p1154_p7 = scmp.ne.s32.totalorder (!%p1153_p3), %s1145_s19, 0 }
  0x4f   : > { %181 = sbr.rel (%p1153_p3) target bundleno = 419 (0x1a3), region = 28  ;;  %s579_s27 = sshll.u32 (!%p1153_p3), %s1063_s16, 4 }
  0x50   : > { %s184_s22 = scalar_lea.sflag (!%p1153_p3), [#allocation4], %s1063_s16  ;;  %s187_s8 = scalar_lea.vmem (!%p1153_p3), [#allocation3], %s579_s27 }
  0x56   : > { %848 = dma.done.wait (%p1154_p7), %s184_s22, 256  }
  0x57   : > { %850 = vsyncadd (%p1154_p7), %s184_s22, 4294967040  ;;  %p1155_p13 = scmp.ne.s32.totalorder %s1143_s17, 0 }
  0x59   : > { %852 = dma.done.wait (%p1155_p13), [#allocation7], 1024  }
  0x5a   : > { %854 = vsyncadd (%p1155_p13), [#allocation7], 4294966272  ;;  %v725_v0 = vld [vmem:[#allocation6] sm:$0xff]   ;;  %v726_v1 = vld [vmem:[#allocation6 + $0x8] sm:$0xff]   ;;  %v370_v10 = vlaneseq  ;;  %s606_s17 = sshll.u32 %s873_s12, 8  ;;  %s211_s19 = scalar_lea.vmem [#allocation8], %s579_s27 }
  0x5b   : > { %628 = vmatprep.subr.bf16.mxu0 %v725_v0  ;;  %v727_v2 = vld [vmem:[#allocation6 + $0x10] sm:$0xff]   ;;  %v728_v3 = vld [vmem:[#allocation6 + $0x18] sm:$0xff]   ;;  %v729_v5 = vld [vmem:[#allocation6 + $0x20] sm:$0xff]   ;;  %s468_s21 = sshll.u32 %s211_s19, 4  ;;  %s1085_s4 = scalar_lea.hbm %s1138_s2, %s606_s17  ;;  %s1087_s21 = int_to_ptr.vmem [resolvable:$true] %s468_s21 }
  0x5c   : > { %629 = vmatpush3.bf16.msra.mxu0 %v725_v0  ;;  %v733_v4 = vld [vmem:[%s187_s8] sm:$0xff]   ;;  %v730_v6 = vld [vmem:[#allocation6 + $0x28] sm:$0xff]   ;;  %v732_v8 = vld [vmem:[#allocation6 + $0x38] sm:$0xff]   ;;  %v371_v11 = vshrl.u32 %v370_v10, 7  ;;  %s454_s12 = scalar_lea.sflag [#allocation5], %s1063_s16  ;;  %s795_s5 = scalar_lea.vmem %s1087_s21, 256 }
  0x5d   : > { %630 = vmatprep.subr.bf16.mxu0 %v726_v1  ;;  %644 = vmatprep.mubr.bf16.mxu0 %v733_v4  ;;  %v731_v7 = vld [vmem:[#allocation6 + $0x30] sm:$0xff]   ;;  %v734_v9 = vld [vmem:[%s187_s8 + $0x8] sm:$0xff]   ;;  %p796_p4 = scmp.ne.s32.totalorder %s1087_s21, %s795_s5  ;;  %s887_s15 = smov [#allocation8]  }
  0x5e   : > { %v374_v13 = vadd.s32 24, %v371_v11  ;;  %s799_s29 = sshll.u32 %s887_s15, 4  ;;  %s800_s29 = int_to_ptr.vmem [resolvable:$false] %s799_s29 }
  0x5f   : > { %p797_p6 = pnand %p796_p4, %p1004_p10  ;;  %s801_s30 = scalar_lea.vmem %s800_s29, 512 }
  0x60   : > { %631 = vmatpush3.bf16.msra.mxu0 %v726_v1  ;;  %vm378_vm0 = vcmp.lt.s32.totalorder %v374_v13, 25  ;;  %p802_p12 = scmp.lt.s32.totalorder %s1087_s21, %s800_s29  ;;  %p803_p11 = scmp.lt.s32.totalorder %s801_s30, %s795_s5 }
  0x61   : > { %632 = vmatprep.subr.bf16.mxu0 %v727_v2  ;;  %p798_p8 = pneg %p797_p6 }
  0x62   : > { %p804_p0 = por %p803_p11, %p802_p12 }
  0x64   : > { %633 = vmatpush3.bf16.msra.mxu0 %v727_v2  ;;  %p805_p5 = pnand %p804_p0, %p798_p8 }
  0x65   : > { %634 = vmatprep.subr.bf16.mxu0 %v728_v3 }
  0x68   : > { %635 = vmatpush3.bf16.msra.mxu0 %v728_v3 }
  0x69   : > { %636 = vmatprep.subr.bf16.mxu0 %v729_v5 }
  0x6c   : > { %637 = vmatpush3.bf16.msra.mxu0 %v729_v5 }
  0x6d   : > { %638 = vmatprep.subr.bf16.mxu0 %v730_v6 }
  0x70   : > { %639 = vmatpush3.bf16.msra.mxu0 %v730_v6 }
  0x71   : > { %640 = vmatprep.subr.bf16.mxu0 %v731_v7 }
  0x74   : > { %641 = vmatpush3.bf16.msra.mxu0 %v731_v7 }
  0x75   : > { %642 = vmatprep.subr.bf16.mxu0 %v732_v8 }
  0x78   : > { %643 = vmatpush3.bf16.msra.mxu0 %v732_v8 }
  0x7b   : > { %645 = vmatmul.mubr.bf16.vlgmr.msra.gmra.mrb[0].mxu0 %v734_v9 }
 0x14e   : > { %v646_v12 = vpop.f32.mrb[0].mxu0 }
 0x14f   : > { %v340_v14 = vpop.f32.mrb[1].mxu0 }
 0x150   : > { %v647_v15 = vpop.f32.mrb[2].mxu0 }
 0x151   : > { %v343_v16 = vpop.f32.mrb[3].mxu0  ;;  %v382_v19 = vsel %vm378_vm0, %v647_v15, 0.0 }
 0x152   : > { %v383_v17 = vadd.f32 %v343_v16, %v340_v14 }
 0x154   : > { %v384_v18 = vadd.f32 %v646_v12, %v383_v17 }
 0x156   : > { %v385_v20 = vadd.f32 %v384_v18, %v382_v19 }
 0x158   : > { %v386_v21 = vrot.slane %v385_v20, 4 }
 0x15a   : > { %v387_v22 = vadd.f32 %v386_v21, %v385_v20 }
 0x15c   : > { %v388_v23 = vrot.slane %v387_v22, 2 }
 0x15e   : > { %v389_v24 = vadd.f32 %v388_v23, %v387_v22 }
 0x160   : > { %v390_v25 = vrot.slane %v389_v24, 1 }
 0x162   : > { %v391_v26 = vadd.f32 %v390_v25, %v389_v24 }
 0x164   : > { %v392_v27 = vmul.f32 0.04, %v391_v26 }
 0x166   : > { %v393_v28 = vsub.f32 %v340_v14, %v392_v27  ;;  %v394_v29 = vsub.f32 %v343_v16, %v392_v27  ;;  %v395_v30 = vsub.f32 %v646_v12, %v392_v27  ;;  %v396_v31 = vsub.f32 %v647_v15, %v392_v27 }
 0x168   : > { %v401_v32 = vmul.f32 %v393_v28, %v393_v28  ;;  %v402_v33 = vmul.f32 %v394_v29, %v394_v29  ;;  %v400_v34 = vsel %vm378_vm0, %v396_v31, 0.0  ;;  %v403_v35 = vmul.f32 %v395_v30, %v395_v30 }
 0x169   : > { %v404_v37 = vmul.f32 %v400_v34, %v400_v34 }
 0x16a   : > { %v405_v36 = vadd.f32 %v402_v33, %v401_v32 }
 0x16c   : > { %v406_v38 = vadd.f32 %v405_v36, %v403_v35 }
 0x16e   : > { %v407_v39 = vadd.f32 %v406_v38, %v404_v37 }
 0x170   : > { %v408_v40 = vrot.slane %v407_v39, 4 }
 0x172   : > { %v409_v41 = vadd.f32 %v408_v40, %v407_v39 }
 0x174   : > { %v410_v42 = vrot.slane %v409_v41, 2 }
 0x176   : > { %v411_v43 = vadd.f32 %v410_v42, %v409_v41 }
 0x178   : > { %v412_v44 = vrot.slane %v411_v43, 1 }
 0x17a   : > { %v413_v45 = vadd.f32 %v412_v44, %v411_v43 }
 0x17c   : > { %v414_v46 = vmul.f32 0.04, %v413_v45 }
 0x17e   : > { %v415_v47 = vadd.f32 1e-05, %v414_v46 }
 0x180   : > { %735 = vrsqrt.f32 %v415_v47 }
 0x18a   : > { %v736_v48 = vpop.eup %735 }
 0x18b   : > { %v417_v49 = vmul.f32 %v736_v48, %v393_v28  ;;  %v418_v50 = vmul.f32 %v736_v48, %v394_v29  ;;  %v419_v51 = vmul.f32 %v736_v48, %v395_v30  ;;  %v420_v52 = vmul.f32 %v736_v48, %v396_v31 }
 0x18d   : > { %vm421_vm1 = vcmp.ge.f32.partialorder %v417_v49, 0.0  ;;  %vm422_vm2 = vcmp.ge.f32.partialorder %v418_v50, 0.0  ;;  %vm423_vm3 = vcmp.ge.f32.partialorder %v419_v51, 0.0  ;;  %vm424_vm4 = vcmp.ge.f32.partialorder %v420_v52, 0.0 }
 0x18e   : > { %v425_v53 = vmul.f32 0.2, %v417_v49  ;;  %v426_v54 = vmul.f32 0.2, %v418_v50  ;;  %v427_v55 = vmul.f32 0.2, %v419_v51 }
 0x18f   : > { %v428_v56 = vmul.f32 0.2, %v420_v52 }
 0x190   : > { %v429_v57 = vsel %vm421_vm1, %v417_v49, %v425_v53  ;;  %v430_v58 = vsel %vm422_vm2, %v418_v50, %v426_v54  ;;  %v431_v59 = vsel %vm423_vm3, %v419_v51, %v427_v55 }
 0x191   : > { %v432_v60 = vsel %vm424_vm4, %v420_v52, %v428_v56  ;;  %v610_v61 = vpack.c.bf16 %v430_v58, %v429_v57 }
 0x192   : > { %v615_v62 = vpack.c.bf16 %v432_v60, %v431_v59 }
 0x193   : > { %611 = vst [vmem:[%s211_s19] sm:$0xff] %v610_v61  }
 0x194   : > { %617 = vst [vmem:[%s211_s19 + $0x8] sm:$0xff] %v615_v62  }
 0x195   : > { %808 = shalt.err (!%p805_p5)
}
 0x196   : > { %s809_s23 = scalar_lea.hbm %s1085_s4, 256  ;;  %s813_s26 = scalar_lea.hbm %s1138_s2, 512 }
 0x197   : > { %p810_p9 = scmp.ne.s32.totalorder %s1085_s4, %s809_s23  ;;  %p814_p3 = scmp.lt.u32.totalorder %s1085_s4, %s1138_s2 }
 0x198   : > { %p815_p7 = scmp.lt.u32.totalorder %s813_s26, %s809_s23  ;;  %p817_p4 = scmp.lt.u32.totalorder %s809_s23, %s1085_s4 }
 0x199   : > { %p811_p1 = pnand %p810_p9, %p1004_p10 }
 0x19a   : > { %p816_p13 = por %p815_p7, %p814_p3 }
 0x19b   : > { %p812_p2 = pneg %p811_p1 }
 0x19c   : > { %p818_p6 = por %p817_p4, %p816_p13 }
 0x19e   : > { %p819_p8 = pnand %p818_p6, %p812_p2 }
 0x1a0   : > { %822 = shalt.err (!%p819_p8)
}
 0x1a1   : > { %s888_s8 = smov 64   ;;  %s889_s17 = smov 4  }
 0x1a2   : > { %654 = dma.vmem_to_hbm [thread:$0]  (%p1004_p10), %s1087_s21, 256, %s1085_s4, %s454_s12, %s888_s8, %s888_s8, %s889_s17  }
 0x1a3 PF: > { %s483_s19 = sand.u32 1, %s861_s9   ;;  %p1156_p12 = scmp.ne.s32.totalorder %s1146_s20, 0 }
 0x1a4   : > { %p1157_p11 = scmp.ge.s32.totalorder %s881_s14, 2  ;;  %s484_s6 = scalar_lea.sflag [#allocation5], %s483_s19 }
 0x1a6   : > { %p665_p0 = pnand %p1157_p11, %p1156_p12 }
 0x1a8   : > { %856 = dma.done.wait (!%p665_p0), %s484_s6, 256  }
 0x1a9   : > { %858 = vsyncadd (!%p665_p0), %s484_s6, 4294967040  ;;  %s19_s14 = sadd.s32 1, %s881_s14   ;;  %s1158_s9 = smov %s865_s10 }
 0x1aa   : > { %p16_p5 = scmp.ge.s32.totalorder %s19_s14, 4   ;;  %s1159_s10 = smov %s869_s11 }
 0x1ab   : > { %s1160_s11 = smov %s1013_s28  ;;  %s1161_s12 = smov %s877_s13 }
 0x1ac   : > { %s1162_s13 = smov %s1164_s25  ;;  %18 = sbr.rel (!%p16_p5) target bundleno = 7 (0x7), region = 86 }
 0x1b3   :  { %489 = vsyncpa [#allocation4], 1 }
 0x1b4   :  { %491 = vsyncpa [#allocation4 + $0x1], 1 }
 0x1b5   :  { %492 = vsyncpa [#allocation7], 1 }
 0x1b6   :  { %493 = vsyncpa [#allocation5], 1 }
 0x1b7   :  { %495 = vsyncpa [#allocation5 + $0x1], 1 }

// kernel: _lambda_.7
= control target key start
LH: loop header
LB: loop body
LE: loop exit
PB: predicated region body
PF: predicated region fallthrough
CT: control target
= control target key end

     0   :  { %7 = vsyncpa [#allocation4], 0  ;;  %s1143_s0 = inlined_call_operand.hbm [shape: bf16[2,16,256], index: 0, kind: input, shape index: {}]   ;;  %s1144_s1 = inlined_call_operand.hbm [shape: bf16[256,128], index: 1, kind: input, shape index: {}]   ;;  %s1145_s2 = inlined_call_operand.hbm [shape: bf16[2,16,128], index: 2, kind: output, shape index: {}]  }
   0x1   :  { %9 = vsyncpa [#allocation4 + $0x1], 0 }
   0x2   :  { %10 = vsyncpa [#allocation7], 0 }
   0x3   :  { %11 = vsyncpa [#allocation5], 0 }
   0x4   :  { %13 = vsyncpa [#allocation5 + $0x1], 0  ;;  %s919_s9 = smov 0   ;;  %s921_s10 = smov 0  }
   0x5   :  { %s923_s11 = smov 0   ;;  %s925_s12 = smov 0  }
   0x6   :  { %s927_s13 = smov 0   ;;  %s929_s14 = smov 0  }
   0x7 LB: > { %s581_s15 = sadd.s32 4294967295, %s893_s14   ;;  %s582_s16 = sadd.s32 4294967294, %s893_s14   ;;  %s893_s14 = sphi %s929_s14, %s19_s14   ;;  %s889_s13 = sphi %s927_s13, %s1169_s13   ;;  %s885_s12 = sphi %s925_s12, %s1168_s12   ;;  %s881_s11 = sphi %s923_s11, %s1167_s11   ;;  %s877_s10 = sphi %s921_s10, %s1166_s10   ;;  %s873_s9 = sphi %s919_s9, %s1165_s9  }
   0x8   : > { %p60_p0 = scmp.ne.s32.totalorder %s877_s10, %s873_s9  ;;  %p953_p1 = scmp.eq.s32.totalorder %s581_s15, 0 }
   0x9   : > { %p957_p2 = scmp.eq.s32.totalorder %s581_s15, 1  ;;  %p120_p3 = scmp.eq.s32.totalorder %s582_s16, 1 }
   0xa   : > { %s1150_s17 = scalar_select %p953_p1, 1, 0 }
   0xb   : > { %s1151_s18 = scalar_select %p957_p2, 1, 0 }
   0xc   : > { %p963_p4 = por %p953_p1, %p60_p0  ;;  %p583_p5 = scmp.ge.s32.totalorder %s893_s14, 1 }
   0xd   : > { %p968_p6 = por %p120_p3, %p60_p0  ;;  %p127_p7 = scmp.lt.s32.totalorder %s893_s14, 3 }
   0xe   : > { %s1152_s19 = scalar_select %p963_p4, 1, 0 }
   0xf   : > { %s1153_s20 = scalar_select %p968_p6, 1, 0 }
  0x10   : > { %p973_p8 = pnand %p583_p5, %p127_p7  ;;  %s895_s22 = smov [#allocation6]  }
  0x11   : > { %s143_s23 = sshll.u32 %s895_s22, 4  ;;  %s38_s25 = sadd.s32 1, %s889_s13  ;;  %s144_s23 = int_to_ptr.vmem [resolvable:$true] %s143_s23 }
  0x12   : > { %s1154_s21 = scalar_select %p973_p8, 1, 0 }
  0x13   : > { %p657_p9 = pneg %p973_p8  ;;  %s749_s28 = scalar_lea.hbm %s1144_s1, 2048 }
  0x14   : > { %p750_p12 = scmp.ne.s32.totalorder %s1144_s1, %s749_s28  ;;  %p756_p5 = scmp.lt.u32.totalorder %s749_s28, %s1144_s1 }
  0x15   : > { %p982_p11 = pnand %p657_p9, %p953_p1 }
  0x17   : > { %p751_p13 = pneg %p982_p11 }
  0x19   : > { %p752_p0 = pnand %p751_p13, %p750_p12 }
  0x1b   : > { %p753_p3 = pneg %p752_p0 }
  0x1d   : > { %p758_p7 = pnand %p756_p5, %p753_p3 }
  0x1f   : > { %761 = shalt.err (!%p758_p7)
}
  0x20   : > { %s762_s5 = scalar_lea.vmem %s144_s23, 2048  ;;  %p770_p1 = scmp.lt.s32.totalorder %s144_s23, %s144_s23 }
  0x21   : > { %p763_p9 = scmp.ne.s32.totalorder %s144_s23, %s762_s5  ;;  %p771_p4 = scmp.lt.s32.totalorder %s762_s5, %s762_s5 }
  0x23   : > { %p765_p10 = pnand %p763_p9, %p751_p13  ;;  %p772_p8 = por %p771_p4, %p770_p1 }
  0x25   : > { %p766_p6 = pneg %p765_p10 }
  0x27   : > { %p773_p2 = pnand %p772_p8, %p766_p6 }
  0x29   : > { %776 = shalt.err (!%p773_p2)
}
  0x2a   : > { %s896_s6 = smov 64   ;;  %s897_s7 = smov 4  }
  0x2b   : > { %660 = dma.hbm_to_vmem [thread:$0]  (!%p982_p11), %s1144_s1, 2048, %s144_s23, [#allocation7], %s896_s6, %s896_s6, %s897_s7  }
  0x2c   : > { %p40_p1 = scmp.ge.s32.totalorder %s38_s25, 2  ;;  %s47_s16 = sadd.s32 1, %s881_s11 }
  0x2d   : > { %p54_p2 = scmp.ne.s32.totalorder %s881_s11, %s877_s10  ;;  %p55_p4 = scmp.eq.s32.totalorder %s893_s14, 0 }
  0x2e   : > { %s1171_s25 = smov (%p40_p1, %s38_s25), 0  ;;  %p1157_p8 = scmp.ne.s32.totalorder %s1151_s18, 0 }
  0x2f   : > { %p1009_p6 = por %p55_p4, %p54_p2  ;;  %s42_s24 = ssub.s32 %s889_s13, %s1171_s25 }
  0x30   : > { %p1015_p10 = por %p1157_p8, %p54_p2  ;;  %p670_p12 = scmp.lt.s32.totalorder %s893_s14, 2 }
  0x31   : > { %p45_p11 = scmp.eq.s32.totalorder %s42_s24, 0  ;;  %s157_s23 = sand.u32 1, %s881_s11  }
  0x32   : > { %s586_s27 = sshll.u32 %s157_s23, 4  ;;  %s618_s29 = sshll.u32 %s889_s13, 8 }
  0x33   : > { %s1024_s28 = scalar_select %p45_p11, %s881_s11, %s47_s16  }
  0x34   : > { %s1030_s4 = scalar_lea.hbm %s1143_s0, %s618_s29  ;;  %s161_s18 = scalar_lea.vmem [#allocation3], %s586_s27 }
  0x35   : > { %s170_s5 = sshll.u32 %s161_s18, 4  ;;  %p1036_p13 = pnand %p670_p12, %p1009_p6  ;;  %s1032_s5 = int_to_ptr.vmem [resolvable:$true] %s170_s5 }
  0x36   : > { %s1040_s7 = scalar_lea.sflag [#allocation4], %s157_s23  ;;  %s777_s8 = scalar_lea.hbm %s1030_s4, 256 }
  0x37   : > { %p778_p0 = scmp.ne.s32.totalorder %s1030_s4, %s777_s8  ;;  %p779_p3 = pneg %p1036_p13 }
  0x38   : > { %s782_s22 = scalar_lea.hbm %s1143_s0, 512  ;;  %p783_p9 = scmp.lt.u32.totalorder %s1030_s4, %s1143_s0 }
  0x39   : > { %p780_p5 = pnand %p779_p3, %p778_p0  ;;  %p784_p1 = scmp.lt.u32.totalorder %s782_s22, %s777_s8 }
  0x3a   : > { %p786_p4 = scmp.lt.u32.totalorder %s777_s8, %s1030_s4 }
  0x3b   : > { %p781_p7 = pneg %p780_p5  ;;  %p785_p2 = por %p784_p1, %p783_p9 }
  0x3d   : > { %p787_p6 = por %p786_p4, %p785_p2 }
  0x3f   : > { %p788_p8 = pnand %p787_p6, %p781_p7 }
  0x41   : > { %791 = shalt.err (!%p788_p8)
}
  0x42   : > { %s792_s23 = scalar_lea.vmem %s1032_s5, 256  ;;  %s898_s29 = smov [#allocation3]  }
  0x43   : > { %p793_p12 = scmp.ne.s32.totalorder %s1032_s5, %s792_s23  ;;  %s797_s30 = sshll.u32 %s898_s29, 4  ;;  %s798_s30 = int_to_ptr.vmem [resolvable:$false] %s797_s30 }
  0x44   : > { %s799_s3 = scalar_lea.vmem %s798_s30, 512  ;;  %p800_p5 = scmp.lt.s32.totalorder %s1032_s5, %s798_s30 }
  0x45   : > { %p795_p11 = pnand %p793_p12, %p779_p3  ;;  %p801_p9 = scmp.lt.s32.totalorder %s799_s3, %s792_s23 }
  0x47   : > { %p796_p0 = pneg %p795_p11  ;;  %p802_p1 = por %p801_p9, %p800_p5 }
  0x49   : > { %p803_p2 = pnand %p802_p1, %p796_p0 }
  0x4b   : > { %806 = shalt.err (!%p803_p2)
}
  0x4c   : > { %s899_s18 = smov 128   ;;  %s900_s8 = smov 8  }
  0x4d   : > { %664 = dma.hbm_to_vmem [thread:$0]  (!%p1036_p13), %s1030_s4, 256, %s1032_s5, %s1040_s7, %s899_s18, %s899_s18, %s900_s8  }
  0x4e   : > { %p1160_p3 = scmp.ne.s32.totalorder %s1154_s21, 0 }
  0x4f   : > { %s1071_s15 = sand.u32 (!%p1160_p3), 1, %s877_s10   ;;  %p1161_p7 = scmp.ne.s32.totalorder (!%p1160_p3), %s1152_s19, 0 }
  0x50   : > { %182 = sbr.rel (%p1160_p3) target bundleno = 414 (0x19e), region = 28  ;;  %s590_s16 = sshll.u32 (!%p1160_p3), %s1071_s15, 4 }
  0x51   : > { %s185_s22 = scalar_lea.sflag (!%p1160_p3), [#allocation4], %s1071_s15  ;;  %s1075_s24 = scalar_lea.vmem (!%p1160_p3), [#allocation3], %s590_s16 }
  0x57   : > { %860 = dma.done.wait (%p1161_p7), %s185_s22, 256  }
  0x58   : > { %862 = vsyncadd (%p1161_p7), %s185_s22, 4294967040  ;;  %p1162_p13 = scmp.ne.s32.totalorder %s1150_s17, 0 }
  0x5a   : > { %864 = dma.done.wait (%p1162_p13), [#allocation7], 2048  }
  0x5b   : > { %866 = vsyncadd (%p1162_p13), [#allocation7], 4294965248  ;;  %v728_v0 = vld [vmem:[#allocation6 + $0x40] sm:$0xff]   ;;  %v730_v2 = vld [vmem:[#allocation6 + $0x48] sm:$0xff]   ;;  %v414_v18 = vlaneseq  ;;  %s592_s17 = sshll.u32 %s1071_s15, 3  ;;  %s621_s19 = sshll.u32 %s885_s12, 7 }
  0x5c   : > { %v729_v1 = vld [vmem:[#allocation6] sm:$0xff]   ;;  %627 = vmatprep.subr.bf16.mxu0 %v728_v0  ;;  %v731_v3 = vld [vmem:[#allocation6 + $0x8] sm:$0xff]   ;;  %v732_v4 = vld [vmem:[#allocation6 + $0x50] sm:$0xff]   ;;  %s212_s21 = scalar_lea.vmem [#allocation8], %s592_s17  ;;  %s1092_s7 = scalar_lea.hbm %s1145_s2, %s621_s19 }
  0x5d   : > { %628 = vmatpush3.bf16.msra.mxu0 %v729_v1  ;;  %v733_v5 = vld [vmem:[#allocation6 + $0x10] sm:$0xff]   ;;  %v734_v6 = vld [vmem:[#allocation6 + $0x58] sm:$0xff]   ;;  %v736_v8 = vld [vmem:[#allocation6 + $0x60] sm:$0xff]   ;;  %v415_v19 = vshrl.u32 %v414_v18, 7  ;;  %s478_s4 = sshll.u32 %s212_s21, 4  ;;  %s464_s12 = scalar_lea.sflag [#allocation5], %s1071_s15  ;;  %s1094_s4 = int_to_ptr.vmem [resolvable:$true] %s478_s4 }
  0x5e   : > { %629 = vmatprep.subr.bf16.mxu0 %v730_v2  ;;  %v735_v7 = vld [vmem:[#allocation6 + $0x18] sm:$0xff]   ;;  %v737_v9 = vld [vmem:[#allocation6 + $0x20] sm:$0xff]   ;;  %v738_v10 = vld [vmem:[#allocation6 + $0x68] sm:$0xff]   ;;  %s807_s27 = scalar_lea.vmem %s1094_s4, 128  ;;  %s901_s23 = smov [#allocation8]  }
  0x5f   : > { %v746_v11 = vld [vmem:[%s1075_s24 + $0x4] ss:$8 sps:$4 sm:$0xff]   ;;  %v744_v17 = vld [vmem:[%s1075_s24] ss:$8 sps:$4 sm:$0xff]   ;;  %v416_v20 = vadd.s32 8, %v415_v19  ;;  %p808_p4 = scmp.ne.s32.totalorder %s1094_s4, %s807_s27  ;;  %s811_s29 = sshll.u32 %s901_s23, 4  ;;  %s812_s29 = int_to_ptr.vmem [resolvable:$false] %s811_s29 }
  0x60   : > { %v739_v12 = vld [vmem:[#allocation6 + $0x28] sm:$0xff]   ;;  %396 = vmatprep.mubr.bf16.mxu0 %v746_v11  ;;  %v740_v13 = vld [vmem:[#allocation6 + $0x70] sm:$0xff]   ;;  %v742_v15 = vld [vmem:[#allocation6 + $0x78] sm:$0xff]   ;;  %s813_s30 = scalar_lea.vmem %s812_s29, 256  ;;  %p814_p12 = scmp.lt.s32.totalorder %s1094_s4, %s812_s29 }
  0x61   : > { %630 = vmatpush3.bf16.msra.mxu0 %v731_v3  ;;  %v741_v14 = vld [vmem:[#allocation6 + $0x30] sm:$0xff]   ;;  %v743_v16 = vld [vmem:[#allocation6 + $0x38] sm:$0xff]   ;;  %vm418_vm0 = vcmp.lt.s32.totalorder %v416_v20, 9  ;;  %p809_p6 = pnand %p808_p4, %p1015_p10  ;;  %p815_p11 = scmp.lt.s32.totalorder %s813_s30, %s807_s27 }
  0x62   : > { %631 = vmatprep.subr.bf16.mxu0 %v732_v4 }
  0x63   : > { %p810_p8 = pneg %p809_p6  ;;  %p816_p0 = por %p815_p11, %p814_p12 }
  0x65   : > { %632 = vmatpush3.bf16.msra.mxu0 %v733_v5  ;;  %p817_p5 = pnand %p816_p0, %p810_p8 }
  0x66   : > { %633 = vmatprep.subr.bf16.mxu0 %v734_v6 }
  0x69   : > { %634 = vmatpush3.bf16.msra.mxu0 %v735_v7 }
  0x6a   : > { %635 = vmatprep.subr.bf16.mxu0 %v736_v8 }
  0x6d   : > { %636 = vmatpush3.bf16.msra.mxu0 %v737_v9 }
  0x6e   : > { %637 = vmatprep.subr.bf16.mxu0 %v738_v10 }
  0x71   : > { %638 = vmatpush3.bf16.msra.mxu0 %v739_v12 }
  0x72   : > { %639 = vmatprep.subr.bf16.mxu0 %v740_v13 }
  0x75   : > { %640 = vmatpush3.bf16.msra.mxu0 %v741_v14 }
  0x76   : > { %641 = vmatprep.subr.bf16.mxu0 %v742_v15 }
  0x79   : > { %642 = vmatpush3.bf16.msra.mxu0 %v743_v16 }
  0x7c   : > { %397 = vmatmul.mubr.bf16.vlgmr.msra.gmra.mrb[0].mxu0 %v744_v17 }
 0x14f   : > { %v643_v21 = vpop.f32.mrb[0].mxu0 }
 0x150   : > { %v644_v22 = vpop.f32.mrb[1].mxu0 }
 0x151   : > { %v645_v23 = vadd.f32 %v644_v22, %v643_v21  ;;  %v646_v24 = vpop.f32.mrb[2].mxu0 }
 0x152   : > { %v647_v25 = vpop.f32.mrb[3].mxu0 }
 0x153   : > { %v648_v26 = vadd.f32 %v647_v25, %v646_v24 }
 0x155   : > { %v420_v27 = vsel %vm418_vm0, %v648_v26, 0.0 }
 0x156   : > { %v421_v28 = vadd.f32 %v645_v23, %v420_v27 }
 0x158   : > { %v422_v29 = vrot.slane %v421_v28, 4 }
 0x15a   : > { %v423_v30 = vadd.f32 %v422_v29, %v421_v28 }
 0x15c   : > { %v424_v31 = vrot.slane %v423_v30, 2 }
 0x15e   : > { %v425_v32 = vadd.f32 %v424_v31, %v423_v30 }
 0x160   : > { %v426_v33 = vrot.slane %v425_v32, 1 }
 0x162   : > { %v427_v34 = vadd.f32 %v426_v33, %v425_v32 }
 0x164   : > { %v428_v35 = vmul.f32 0.11111111, %v427_v34 }
 0x166   : > { %v429_v36 = vsub.f32 %v645_v23, %v428_v35  ;;  %v430_v37 = vsub.f32 %v648_v26, %v428_v35 }
 0x168   : > { %v432_v38 = vsel %vm418_vm0, %v430_v37, 0.0  ;;  %v433_v39 = vmul.f32 %v429_v36, %v429_v36 }
 0x169   : > { %v434_v40 = vmul.f32 %v432_v38, %v432_v38 }
 0x16b   : > { %v435_v41 = vadd.f32 %v434_v40, %v433_v39 }
 0x16d   : > { %v436_v42 = vrot.slane %v435_v41, 4 }
 0x16f   : > { %v437_v43 = vadd.f32 %v436_v42, %v435_v41 }
 0x171   : > { %v438_v44 = vrot.slane %v437_v43, 2 }
 0x173   : > { %v439_v45 = vadd.f32 %v438_v44, %v437_v43 }
 0x175   : > { %v440_v46 = vrot.slane %v439_v45, 1 }
 0x177   : > { %v441_v47 = vadd.f32 %v440_v46, %v439_v45 }
 0x179   : > { %v442_v48 = vmul.f32 0.11111111, %v441_v47 }
 0x17b   : > { %v443_v49 = vadd.f32 1e-05, %v442_v48 }
 0x17d   : > { %747 = vrsqrt.f32 %v443_v49 }
 0x187   : > { %v748_v50 = vpop.eup %747 }
 0x188   : > { %v445_v51 = vmul.f32 %v748_v50, %v429_v36  ;;  %v446_v52 = vmul.f32 %v748_v50, %v430_v37 }
 0x18a   : > { %vm447_vm1 = vcmp.ge.f32.partialorder %v445_v51, 0.0  ;;  %vm448_vm2 = vcmp.ge.f32.partialorder %v446_v52, 0.0  ;;  %v449_v53 = vmul.f32 0.2, %v445_v51  ;;  %v450_v54 = vmul.f32 0.2, %v446_v52 }
 0x18c   : > { %v451_v55 = vsel %vm447_vm1, %v445_v51, %v449_v53  ;;  %v452_v56 = vsel %vm448_vm2, %v446_v52, %v450_v54 }
 0x18d   : > { %v625_v57 = vpack.c.bf16 %v452_v56, %v451_v55 }
 0x18f   : > { %626 = vst [vmem:[%s212_s21] sm:$0xff] %v625_v57  }
 0x190   : > { %820 = shalt.err (!%p817_p5)
}
 0x191   : > { %s821_s3 = scalar_lea.hbm %s1092_s7, 128  ;;  %s825_s16 = scalar_lea.hbm %s1145_s2, 256 }
 0x192   : > { %p822_p9 = scmp.ne.s32.totalorder %s1092_s7, %s821_s3  ;;  %p826_p3 = scmp.lt.u32.totalorder %s1092_s7, %s1145_s2 }
 0x193   : > { %p827_p7 = scmp.lt.u32.totalorder %s825_s16, %s821_s3  ;;  %p829_p4 = scmp.lt.u32.totalorder %s821_s3, %s1092_s7 }
 0x194   : > { %p823_p1 = pnand %p822_p9, %p1015_p10 }
 0x195   : > { %p828_p13 = por %p827_p7, %p826_p3 }
 0x196   : > { %p824_p2 = pneg %p823_p1 }
 0x197   : > { %p830_p6 = por %p829_p4, %p828_p13 }
 0x199   : > { %p831_p8 = pnand %p830_p6, %p824_p2 }
 0x19b   : > { %834 = shalt.err (!%p831_p8)
}
 0x19c   : > { %s902_s17 = smov 64   ;;  %s903_s19 = smov 4  }
 0x19d   : > { %655 = dma.vmem_to_hbm [thread:$0]  (%p1015_p10), %s1094_s4, 128, %s1092_s7, %s464_s12, %s902_s17, %s902_s17, %s903_s19  }
 0x19e PF: > { %s493_s21 = sand.u32 1, %s873_s9   ;;  %p1163_p12 = scmp.ne.s32.totalorder %s1153_s20, 0 }
 0x19f   : > { %p1164_p11 = scmp.ge.s32.totalorder %s893_s14, 2  ;;  %s494_s5 = scalar_lea.sflag [#allocation5], %s493_s21 }
 0x1a1   : > { %p666_p0 = pnand %p1164_p11, %p1163_p12 }
 0x1a3   : > { %868 = dma.done.wait (!%p666_p0), %s494_s5, 128  }
 0x1a4   : > { %870 = vsyncadd (!%p666_p0), %s494_s5, 4294967168  ;;  %s19_s14 = sadd.s32 1, %s893_s14   ;;  %s1165_s9 = smov %s877_s10 }
 0x1a5   : > { %p16_p5 = scmp.ge.s32.totalorder %s19_s14, 4   ;;  %s1166_s10 = smov %s881_s11 }
 0x1a6   : > { %s1167_s11 = smov %s1024_s28  ;;  %s1168_s12 = smov %s889_s13 }
 0x1a7   : > { %s1169_s13 = smov %s1171_s25  ;;  %18 = sbr.rel (!%p16_p5) target bundleno = 7 (0x7), region = 86 }
 0x1ae   :  { %499 = vsyncpa [#allocation4], 1 }
 0x1af   :  { %501 = vsyncpa [#allocation4 + $0x1], 1 }
 0x1b0   :  { %502 = vsyncpa [#allocation7], 1 }
 0x1b1   :  { %503 = vsyncpa [#allocation5], 1 }
 0x1b2   :  { %505 = vsyncpa [#allocation5 + $0x1], 1 }

// kernel: _lambda_.8
= control target key start
LH: loop header
LB: loop body
LE: loop exit
PB: predicated region body
PF: predicated region fallthrough
CT: control target
= control target key end

     0   :  { %7 = vsyncpa [#allocation4], 0  ;;  %s1385_s0 = inlined_call_operand.hbm [shape: bf16[2,16,512], index: 0, kind: input, shape index: {}]   ;;  %s1386_s1 = inlined_call_operand.hbm [shape: bf16[512,128], index: 1, kind: input, shape index: {}]   ;;  %s1387_s2 = inlined_call_operand.hbm [shape: bf16[2,16,128], index: 2, kind: output, shape index: {}]  }
   0x1   :  { %9 = vsyncpa [#allocation4 + $0x1], 0 }
   0x2   :  { %10 = vsyncpa [#allocation7], 0 }
   0x3   :  { %11 = vsyncpa [#allocation5], 0 }
   0x4   :  { %13 = vsyncpa [#allocation5 + $0x1], 0  ;;  %s1159_s9 = smov 0   ;;  %s1161_s10 = smov 0  }
   0x5   :  { %s1163_s11 = smov 0   ;;  %s1165_s12 = smov 0  }
   0x6   :  { %s1167_s13 = smov 0   ;;  %s1169_s14 = smov 0  }
   0x7 LB: > { %s762_s15 = sadd.s32 4294967295, %s1133_s14   ;;  %s763_s16 = sadd.s32 4294967294, %s1133_s14   ;;  %s1133_s14 = sphi %s1169_s14, %s19_s14   ;;  %s1129_s13 = sphi %s1167_s13, %s1411_s13   ;;  %s1125_s12 = sphi %s1165_s12, %s1410_s12   ;;  %s1121_s11 = sphi %s1163_s11, %s1409_s11   ;;  %s1117_s10 = sphi %s1161_s10, %s1408_s10   ;;  %s1113_s9 = sphi %s1159_s9, %s1407_s9  }
   0x8   : > { %p60_p0 = scmp.ne.s32.totalorder %s1117_s10, %s1113_s9  ;;  %p1193_p1 = scmp.eq.s32.totalorder %s762_s15, 0 }
   0x9   : > { %p1197_p2 = scmp.eq.s32.totalorder %s762_s15, 1  ;;  %p120_p3 = scmp.eq.s32.totalorder %s763_s16, 1 }
   0xa   : > { %s1392_s17 = scalar_select %p1193_p1, 1, 0 }
   0xb   : > { %s1393_s18 = scalar_select %p1197_p2, 1, 0 }
   0xc   : > { %p1203_p4 = por %p1193_p1, %p60_p0  ;;  %p764_p5 = scmp.ge.s32.totalorder %s1133_s14, 1 }
   0xd   : > { %p1208_p6 = por %p120_p3, %p60_p0  ;;  %p127_p7 = scmp.lt.s32.totalorder %s1133_s14, 3 }
   0xe   : > { %s1394_s19 = scalar_select %p1203_p4, 1, 0 }
   0xf   : > { %s1395_s20 = scalar_select %p1208_p6, 1, 0 }
  0x10   : > { %p1213_p8 = pnand %p764_p5, %p127_p7  ;;  %s1135_s22 = smov [#allocation6]  }
  0x11   : > { %s143_s23 = sshll.u32 %s1135_s22, 4  ;;  %s38_s25 = sadd.s32 1, %s1129_s13  ;;  %s144_s23 = int_to_ptr.vmem [resolvable:$true] %s143_s23 }
  0x12   : > { %s1396_s21 = scalar_select %p1213_p8, 1, 0 }
  0x13   : > { %p878_p9 = pneg %p1213_p8  ;;  %s989_s28 = scalar_lea.hbm %s1386_s1, 4096 }
  0x14   : > { %p990_p12 = scmp.ne.s32.totalorder %s1386_s1, %s989_s28  ;;  %p996_p5 = scmp.lt.u32.totalorder %s989_s28, %s1386_s1 }
  0x15   : > { %p1222_p11 = pnand %p878_p9, %p1193_p1 }
  0x17   : > { %p991_p13 = pneg %p1222_p11 }
  0x19   : > { %p992_p0 = pnand %p991_p13, %p990_p12 }
  0x1b   : > { %p993_p3 = pneg %p992_p0 }
  0x1d   : > { %p998_p7 = pnand %p996_p5, %p993_p3 }
  0x1f   : > { %1001 = shalt.err (!%p998_p7)
}
  0x20   : > { %s1002_s5 = scalar_lea.vmem %s144_s23, 4096  ;;  %p1010_p1 = scmp.lt.s32.totalorder %s144_s23, %s144_s23 }
  0x21   : > { %p1003_p9 = scmp.ne.s32.totalorder %s144_s23, %s1002_s5  ;;  %p1011_p4 = scmp.lt.s32.totalorder %s1002_s5, %s1002_s5 }
  0x23   : > { %p1005_p10 = pnand %p1003_p9, %p991_p13  ;;  %p1012_p8 = por %p1011_p4, %p1010_p1 }
  0x25   : > { %p1006_p6 = pneg %p1005_p10 }
  0x27   : > { %p1013_p2 = pnand %p1012_p8, %p1006_p6 }
  0x29   : > { %1016 = shalt.err (!%p1013_p2)
}
  0x2a   : > { %s1136_s6 = smov 64   ;;  %s1137_s7 = smov 4  }
  0x2b   : > { %881 = dma.hbm_to_vmem [thread:$0]  (!%p1222_p11), %s1386_s1, 4096, %s144_s23, [#allocation7], %s1136_s6, %s1136_s6, %s1137_s7  }
  0x2c   : > { %p40_p1 = scmp.ge.s32.totalorder %s38_s25, 2  ;;  %s47_s16 = sadd.s32 1, %s1121_s11 }
  0x2d   : > { %p54_p2 = scmp.ne.s32.totalorder %s1121_s11, %s1117_s10  ;;  %p55_p4 = scmp.eq.s32.totalorder %s1133_s14, 0 }
  0x2e   : > { %s1413_s25 = smov (%p40_p1, %s38_s25), 0  ;;  %p1399_p8 = scmp.ne.s32.totalorder %s1393_s18, 0 }
  0x2f   : > { %p1249_p6 = por %p55_p4, %p54_p2  ;;  %s42_s24 = ssub.s32 %s1129_s13, %s1413_s25 }
  0x30   : > { %p1255_p10 = por %p1399_p8, %p54_p2  ;;  %p891_p12 = scmp.lt.s32.totalorder %s1133_s14, 2 }
  0x31   : > { %p45_p11 = scmp.eq.s32.totalorder %s42_s24, 0  ;;  %s157_s23 = sand.u32 1, %s1121_s11  }
  0x32   : > { %s767_s27 = sshll.u32 %s157_s23, 5  ;;  %s817_s29 = sshll.u32 %s1129_s13, 9 }
  0x33   : > { %s1264_s28 = scalar_select %p45_p11, %s1121_s11, %s47_s16  }
  0x34   : > { %s1270_s4 = scalar_lea.hbm %s1385_s0, %s817_s29  ;;  %s161_s18 = scalar_lea.vmem [#allocation3], %s767_s27 }
  0x35   : > { %s170_s5 = sshll.u32 %s161_s18, 4  ;;  %p1276_p13 = pnand %p891_p12, %p1249_p6  ;;  %s1272_s5 = int_to_ptr.vmem [resolvable:$true] %s170_s5 }
  0x36   : > { %s1280_s7 = scalar_lea.sflag [#allocation4], %s157_s23  ;;  %s1017_s8 = scalar_lea.hbm %s1270_s4, 512 }
  0x37   : > { %p1018_p0 = scmp.ne.s32.totalorder %s1270_s4, %s1017_s8  ;;  %p1019_p3 = pneg %p1276_p13 }
  0x38   : > { %s1022_s22 = scalar_lea.hbm %s1385_s0, 1024  ;;  %p1023_p9 = scmp.lt.u32.totalorder %s1270_s4, %s1385_s0 }
  0x39   : > { %p1020_p5 = pnand %p1019_p3, %p1018_p0  ;;  %p1024_p1 = scmp.lt.u32.totalorder %s1022_s22, %s1017_s8 }
  0x3a   : > { %p1026_p4 = scmp.lt.u32.totalorder %s1017_s8, %s1270_s4 }
  0x3b   : > { %p1021_p7 = pneg %p1020_p5  ;;  %p1025_p2 = por %p1024_p1, %p1023_p9 }
  0x3d   : > { %p1027_p6 = por %p1026_p4, %p1025_p2 }
  0x3f   : > { %p1028_p8 = pnand %p1027_p6, %p1021_p7 }
  0x41   : > { %1031 = shalt.err (!%p1028_p8)
}
  0x42   : > { %s1032_s23 = scalar_lea.vmem %s1272_s5, 512  ;;  %s1138_s29 = smov [#allocation3]  }
  0x43   : > { %p1033_p12 = scmp.ne.s32.totalorder %s1272_s5, %s1032_s23  ;;  %s1037_s30 = sshll.u32 %s1138_s29, 4  ;;  %s1038_s30 = int_to_ptr.vmem [resolvable:$false] %s1037_s30 }
  0x44   : > { %s1039_s3 = scalar_lea.vmem %s1038_s30, 1024  ;;  %p1040_p5 = scmp.lt.s32.totalorder %s1272_s5, %s1038_s30 }
  0x45   : > { %p1035_p11 = pnand %p1033_p12, %p1019_p3  ;;  %p1041_p9 = scmp.lt.s32.totalorder %s1039_s3, %s1032_s23 }
  0x47   : > { %p1036_p0 = pneg %p1035_p11  ;;  %p1042_p1 = por %p1041_p9, %p1040_p5 }
  0x49   : > { %p1043_p2 = pnand %p1042_p1, %p1036_p0 }
  0x4b   : > { %1046 = shalt.err (!%p1043_p2)
}
  0x4c   : > { %s1139_s18 = smov 256   ;;  %s1140_s8 = smov 16  }
  0x4d   : > { %885 = dma.hbm_to_vmem [thread:$0]  (!%p1276_p13), %s1270_s4, 512, %s1272_s5, %s1280_s7, %s1139_s18, %s1139_s18, %s1140_s8  }
  0x4e   : > { %p1402_p3 = scmp.ne.s32.totalorder %s1396_s21, 0 }
  0x4f   : > { %s1311_s15 = sand.u32 (!%p1402_p3), 1, %s1117_s10   ;;  %p1403_p7 = scmp.ne.s32.totalorder (!%p1402_p3), %s1394_s19, 0 }
  0x50   : > { %182 = sbr.rel (%p1402_p3) target bundleno = 416 (0x1a0), region = 28  ;;  %s771_s16 = sshll.u32 (!%p1402_p3), %s1311_s15, 5 }
  0x51   : > { %s185_s22 = scalar_lea.sflag (!%p1402_p3), [#allocation4], %s1311_s15  ;;  %s1315_s24 = scalar_lea.vmem (!%p1402_p3), [#allocation3], %s771_s16 }
  0x57   : > { %1100 = dma.done.wait (%p1403_p7), %s185_s22, 512  }
  0x58   : > { %1102 = vsyncadd (%p1403_p7), %s185_s22, 4294966784  ;;  %p1404_p13 = scmp.ne.s32.totalorder %s1392_s17, 0 }
  0x5a   : > { %1104 = dma.done.wait (%p1404_p13), [#allocation7], 4096  }
  0x5b   : > { %1106 = vsyncadd (%p1404_p13), [#allocation7], 4294963200  ;;  %v949_v0 = vld [vmem:[#allocation6 + $0x40] sm:$0xff]   ;;  %v953_v4 = vld [vmem:[#allocation6 + $0x48] sm:$0xff]   ;;  %s773_s17 = sshll.u32 %s1311_s15, 3  ;;  %s820_s19 = sshll.u32 %s1125_s12, 7 }
  0x5c   : > { %v950_v1 = vld [vmem:[#allocation6 + $0xc0] sm:$0xff]   ;;  %826 = vmatprep.subr.bf16.mxu0 %v949_v0  ;;  %v954_v5 = vld [vmem:[#allocation6 + $0xc8] sm:$0xff]   ;;  %v957_v8 = vld [vmem:[#allocation6 + $0x50] sm:$0xff]   ;;  %s212_s21 = scalar_lea.vmem [#allocation8], %s773_s17  ;;  %s1334_s7 = scalar_lea.hbm %s1387_s2, %s820_s19 }
  0x5d   : > { %v951_v2 = vld [vmem:[#allocation6] sm:$0xff]   ;;  %848 = vmatprep.subr.bf16.mxu1 %v950_v1  ;;  %v955_v6 = vld [vmem:[#allocation6 + $0x8] sm:$0xff]   ;;  %v958_v9 = vld [vmem:[#allocation6 + $0xd0] sm:$0xff]   ;;  %s659_s4 = sshll.u32 %s212_s21, 4  ;;  %s645_s12 = scalar_lea.sflag [#allocation5], %s1311_s15  ;;  %s1336_s4 = int_to_ptr.vmem [resolvable:$true] %s659_s4 }
  0x5e   : > { %v952_v3 = vld [vmem:[#allocation6 + $0x80] sm:$0xff]   ;;  %827 = vmatpush3.bf16.msra.mxu0 %v951_v2  ;;  %v956_v7 = vld [vmem:[#allocation6 + $0x88] sm:$0xff]   ;;  %v959_v10 = vld [vmem:[#allocation6 + $0x10] sm:$0xff]   ;;  %s1047_s27 = scalar_lea.vmem %s1336_s4, 128  ;;  %s1141_s23 = smov [#allocation8]  }
  0x5f   : > { %849 = vmatpush3.bf16.msra.mxu1 %v952_v3  ;;  %828 = vmatprep.subr.bf16.mxu0 %v953_v4  ;;  %v960_v11 = vld [vmem:[#allocation6 + $0x90] sm:$0xff]   ;;  %v961_v12 = vld [vmem:[#allocation6 + $0x58] sm:$0xff]   ;;  %v965_v16 = vld [vmem:[#allocation6 + $0x60] sm:$0xff]   ;;  %p1048_p4 = scmp.ne.s32.totalorder %s1336_s4, %s1047_s27  ;;  %s1051_s29 = sshll.u32 %s1141_s23, 4  ;;  %s1052_s29 = int_to_ptr.vmem [resolvable:$false] %s1051_s29 }
  0x60   : > { %850 = vmatprep.subr.bf16.mxu1 %v954_v5  ;;  %v962_v13 = vld [vmem:[#allocation6 + $0xd8] sm:$0xff]   ;;  %v966_v17 = vld [vmem:[#allocation6 + $0xe0] sm:$0xff]   ;;  %v969_v20 = vld [vmem:[#allocation6 + $0x68] sm:$0xff]   ;;  %s1053_s30 = scalar_lea.vmem %s1052_s29, 256  ;;  %p1054_p12 = scmp.lt.s32.totalorder %s1336_s4, %s1052_s29 }
  0x61   : > { %v963_v14 = vld [vmem:[#allocation6 + $0x18] sm:$0xff]   ;;  %v967_v18 = vld [vmem:[#allocation6 + $0x20] sm:$0xff]   ;;  %v970_v21 = vld [vmem:[#allocation6 + $0xe8] sm:$0xff]   ;;  %p1049_p6 = pnand %p1048_p4, %p1255_p10  ;;  %p1055_p11 = scmp.lt.s32.totalorder %s1053_s30, %s1047_s27 }
  0x62   : > { %829 = vmatpush3.bf16.msra.mxu0 %v955_v6  ;;  %v964_v15 = vld [vmem:[#allocation6 + $0x98] sm:$0xff]   ;;  %v968_v19 = vld [vmem:[#allocation6 + $0xa0] sm:$0xff]   ;;  %v971_v22 = vld [vmem:[#allocation6 + $0x28] sm:$0xff]  }
  0x63   : > { %851 = vmatpush3.bf16.msra.mxu1 %v956_v7  ;;  %830 = vmatprep.subr.bf16.mxu0 %v957_v8  ;;  %v972_v23 = vld [vmem:[#allocation6 + $0xa8] sm:$0xff]   ;;  %v973_v24 = vld [vmem:[#allocation6 + $0x70] sm:$0xff]   ;;  %v977_v28 = vld [vmem:[#allocation6 + $0x78] sm:$0xff]   ;;  %p1050_p8 = pneg %p1049_p6  ;;  %p1056_p0 = por %p1055_p11, %p1054_p12 }
  0x64   : > { %852 = vmatprep.subr.bf16.mxu1 %v958_v9  ;;  %v974_v25 = vld [vmem:[#allocation6 + $0xf0] sm:$0xff]   ;;  %v978_v29 = vld [vmem:[#allocation6 + $0xf8] sm:$0xff]  }
  0x65   : > { %v975_v26 = vld [vmem:[#allocation6 + $0x30] sm:$0xff]   ;;  %v979_v30 = vld [vmem:[#allocation6 + $0x38] sm:$0xff]   ;;  %p1057_p5 = pnand %p1056_p0, %p1050_p8 }
  0x66   : > { %831 = vmatpush3.bf16.msra.mxu0 %v959_v10  ;;  %v976_v27 = vld [vmem:[#allocation6 + $0xb0] sm:$0xff]   ;;  %v980_v31 = vld [vmem:[#allocation6 + $0xb8] sm:$0xff]  }
  0x67   : > { %853 = vmatpush3.bf16.msra.mxu1 %v960_v11  ;;  %832 = vmatprep.subr.bf16.mxu0 %v961_v12  ;;  %v981_v32 = vld [vmem:[%s1315_s24] ss:$16 sps:$4 sm:$0xff]   ;;  %v983_v33 = vld [vmem:[%s1315_s24 + $0x4] ss:$16 sps:$4 sm:$0xff]   ;;  %v984_v34 = vld [vmem:[%s1315_s24 + $0x8] ss:$16 sps:$4 sm:$0xff]  }
  0x68   : > { %854 = vmatprep.subr.bf16.mxu1 %v962_v13  ;;  %v986_v35 = vld [vmem:[%s1315_s24 + $0xc] ss:$16 sps:$4 sm:$0xff]   ;;  %536 = vmatprep.mubr.bf16.mxu0 %v983_v33 }
  0x69   : > { %577 = vmatprep.mubr.bf16.mxu1 %v986_v35 }
  0x6a   : > { %833 = vmatpush3.bf16.msra.mxu0 %v963_v14 }
  0x6b   : > { %855 = vmatpush3.bf16.msra.mxu1 %v964_v15  ;;  %834 = vmatprep.subr.bf16.mxu0 %v965_v16 }
  0x6c   : > { %856 = vmatprep.subr.bf16.mxu1 %v966_v17 }
  0x6e   : > { %835 = vmatpush3.bf16.msra.mxu0 %v967_v18 }
  0x6f   : > { %857 = vmatpush3.bf16.msra.mxu1 %v968_v19  ;;  %836 = vmatprep.subr.bf16.mxu0 %v969_v20 }
  0x70   : > { %858 = vmatprep.subr.bf16.mxu1 %v970_v21 }
  0x72   : > { %837 = vmatpush3.bf16.msra.mxu0 %v971_v22 }
  0x73   : > { %859 = vmatpush3.bf16.msra.mxu1 %v972_v23  ;;  %838 = vmatprep.subr.bf16.mxu0 %v973_v24 }
  0x74   : > { %860 = vmatprep.subr.bf16.mxu1 %v974_v25 }
  0x76   : > { %839 = vmatpush3.bf16.msra.mxu0 %v975_v26 }
  0x77   : > { %861 = vmatpush3.bf16.msra.mxu1 %v976_v27  ;;  %840 = vmatprep.subr.bf16.mxu0 %v977_v28 }
  0x78   : > { %862 = vmatprep.subr.bf16.mxu1 %v978_v29 }
  0x7a   : > { %841 = vmatpush3.bf16.msra.mxu0 %v979_v30 }
  0x7b   : > { %863 = vmatpush3.bf16.msra.mxu1 %v980_v31 }
  0x7d   : > { %537 = vmatmul.mubr.bf16.vlgmr.msra.gmra.mrb[0].mxu0 %v981_v32 }
  0x7e   : > { %578 = vmatmul.mubr.bf16.vlgmr.msra.gmra.mrb[0].mxu1 %v984_v34 }
 0x150   : > { %v842_v36 = vpop.f32.mrb[0].mxu0 }
 0x151   : > { %v864_v37 = vpop.f32.mrb[0].mxu1  ;;  %v843_v38 = vpop.f32.mrb[1].mxu0 }
 0x152   : > { %v844_v39 = vadd.f32 %v843_v38, %v842_v36  ;;  %v865_v40 = vpop.f32.mrb[1].mxu1  ;;  %v845_v41 = vpop.f32.mrb[2].mxu0 }
 0x153   : > { %v866_v42 = vadd.f32 %v865_v40, %v864_v37  ;;  %v867_v43 = vpop.f32.mrb[2].mxu1  ;;  %v846_v44 = vpop.f32.mrb[3].mxu0 }
 0x154   : > { %v847_v45 = vadd.f32 %v846_v44, %v845_v41  ;;  %v868_v46 = vpop.f32.mrb[3].mxu1 }
 0x155   : > { %v580_v47 = vadd.f32 %v866_v42, %v844_v39  ;;  %v869_v48 = vadd.f32 %v868_v46, %v867_v43 }
 0x157   : > { %v583_v49 = vadd.f32 %v869_v48, %v847_v45 }
 0x159   : > { %v602_v50 = vadd.f32 %v583_v49, %v580_v47 }
 0x15b   : > { %v603_v51 = vrot.slane %v602_v50, 4 }
 0x15d   : > { %v604_v52 = vadd.f32 %v603_v51, %v602_v50 }
 0x15f   : > { %v605_v53 = vrot.slane %v604_v52, 2 }
 0x161   : > { %v606_v54 = vadd.f32 %v605_v53, %v604_v52 }
 0x163   : > { %v607_v55 = vrot.slane %v606_v54, 1 }
 0x165   : > { %v608_v56 = vadd.f32 %v607_v55, %v606_v54 }
 0x167   : > { %v609_v57 = vmul.f32 0.0625, %v608_v56 }
 0x169   : > { %v610_v58 = vsub.f32 %v580_v47, %v609_v57  ;;  %v611_v59 = vsub.f32 %v583_v49, %v609_v57 }
 0x16b   : > { %v614_v60 = vmul.f32 %v610_v58, %v610_v58  ;;  %v615_v61 = vmul.f32 %v611_v59, %v611_v59 }
 0x16d   : > { %v616_v62 = vadd.f32 %v615_v61, %v614_v60 }
 0x16f   : > { %v617_v63 = vrot.slane %v616_v62, 4 }
 0x171   : > { %v618_v0 = vadd.f32 %v617_v63, %v616_v62 }
 0x173   : > { %v619_v1 = vrot.slane %v618_v0, 2 }
 0x175   : > { %v620_v2 = vadd.f32 %v619_v1, %v618_v0 }
 0x177   : > { %v621_v3 = vrot.slane %v620_v2, 1 }
 0x179   : > { %v622_v4 = vadd.f32 %v621_v3, %v620_v2 }
 0x17b   : > { %v623_v5 = vmul.f32 0.0625, %v622_v4 }
 0x17d   : > { %v624_v6 = vadd.f32 1e-05, %v623_v5 }
 0x17f   : > { %987 = vrsqrt.f32 %v624_v6 }
 0x189   : > { %v988_v7 = vpop.eup %987 }
 0x18a   : > { %v626_v8 = vmul.f32 %v988_v7, %v610_v58  ;;  %v627_v9 = vmul.f32 %v988_v7, %v611_v59 }
 0x18c   : > { %vm628_vm0 = vcmp.ge.f32.partialorder %v626_v8, 0.0  ;;  %vm629_vm1 = vcmp.ge.f32.partialorder %v627_v9, 0.0  ;;  %v630_v10 = vmul.f32 0.2, %v626_v8  ;;  %v631_v11 = vmul.f32 0.2, %v627_v9 }
 0x18e   : > { %v632_v12 = vsel %vm628_vm0, %v626_v8, %v630_v10  ;;  %v633_v13 = vsel %vm629_vm1, %v627_v9, %v631_v11 }
 0x18f   : > { %v824_v14 = vpack.c.bf16 %v633_v13, %v632_v12 }
 0x191   : > { %825 = vst [vmem:[%s212_s21] sm:$0xff] %v824_v14  }
 0x192   : > { %1060 = shalt.err (!%p1057_p5)
}
 0x193   : > { %s1061_s3 = scalar_lea.hbm %s1334_s7, 128  ;;  %s1065_s16 = scalar_lea.hbm %s1387_s2, 256 }
 0x194   : > { %p1062_p9 = scmp.ne.s32.totalorder %s1334_s7, %s1061_s3  ;;  %p1066_p3 = scmp.lt.u32.totalorder %s1334_s7, %s1387_s2 }
 0x195   : > { %p1067_p7 = scmp.lt.u32.totalorder %s1065_s16, %s1061_s3  ;;  %p1069_p4 = scmp.lt.u32.totalorder %s1061_s3, %s1334_s7 }
 0x196   : > { %p1063_p1 = pnand %p1062_p9, %p1255_p10 }
 0x197   : > { %p1068_p13 = por %p1067_p7, %p1066_p3 }
 0x198   : > { %p1064_p2 = pneg %p1063_p1 }
 0x199   : > { %p1070_p6 = por %p1069_p4, %p1068_p13 }
 0x19b   : > { %p1071_p8 = pnand %p1070_p6, %p1064_p2 }
 0x19d   : > { %1074 = shalt.err (!%p1071_p8)
}
 0x19e   : > { %s1142_s17 = smov 64   ;;  %s1143_s19 = smov 4  }
 0x19f   : > { %876 = dma.vmem_to_hbm [thread:$0]  (%p1255_p10), %s1336_s4, 128, %s1334_s7, %s645_s12, %s1142_s17, %s1142_s17, %s1143_s19  }
 0x1a0 PF: > { %s674_s21 = sand.u32 1, %s1113_s9   ;;  %p1405_p12 = scmp.ne.s32.totalorder %s1395_s20, 0 }
 0x1a1   : > { %p1406_p11 = scmp.ge.s32.totalorder %s1133_s14, 2  ;;  %s675_s5 = scalar_lea.sflag [#allocation5], %s674_s21 }
 0x1a3   : > { %p887_p0 = pnand %p1406_p11, %p1405_p12 }
 0x1a5   : > { %1108 = dma.done.wait (!%p887_p0), %s675_s5, 128  }
 0x1a6   : > { %1110 = vsyncadd (!%p887_p0), %s675_s5, 4294967168  ;;  %s19_s14 = sadd.s32 1, %s1133_s14   ;;  %s1407_s9 = smov %s1117_s10 }
 0x1a7   : > { %p16_p5 = scmp.ge.s32.totalorder %s19_s14, 4   ;;  %s1408_s10 = smov %s1121_s11 }
 0x1a8   : > { %s1409_s11 = smov %s1264_s28  ;;  %s1410_s12 = smov %s1129_s13 }
 0x1a9   : > { %s1411_s13 = smov %s1413_s25  ;;  %18 = sbr.rel (!%p16_p5) target bundleno = 7 (0x7), region = 86 }
 0x1b0   :  { %680 = vsyncpa [#allocation4], 1 }
 0x1b1   :  { %682 = vsyncpa [#allocation4 + $0x1], 1 }
 0x1b2   :  { %683 = vsyncpa [#allocation7], 1 }
 0x1b3   :  { %684 = vsyncpa [#allocation5], 1 }
 0x1b4   :  { %686 = vsyncpa [#allocation5 + $0x1], 1 }

// kernel: _lambda_.9
= control target key start
LH: loop header
LB: loop body
LE: loop exit
PB: predicated region body
PF: predicated region fallthrough
CT: control target
= control target key end

     0   :  { %8 = vsyncpa [#allocation4], 0  ;;  %s2118_s0 = inlined_call_operand.hbm [shape: bf16[2,32,1024], index: 0, kind: input, shape index: {}]   ;;  %s2119_s1 = inlined_call_operand.hbm [shape: bf16[1024,128], index: 1, kind: input, shape index: {}]   ;;  %s2120_s2 = inlined_call_operand.hbm [shape: f32[1,128], index: 2, kind: input, shape index: {}]   ;;  %s2121_s3 = inlined_call_operand.hbm [shape: bf16[2,32,128], index: 3, kind: output, shape index: {}]  }
   0x1   :  { %10 = vsyncpa [#allocation4 + $0x1], 0 }
   0x2   :  { %11 = vsyncpa [#allocation7], 0 }
   0x3   :  { %12 = vsyncpa [#allocation5], 0 }
   0x4   :  { %14 = vsyncpa [#allocation5 + $0x1], 0  ;;  %s1843_s12 = smov 0   ;;  %s1845_s13 = smov 0  }
   0x5   :  { %s1847_s14 = smov 0   ;;  %s1849_s15 = smov 0  }
   0x6   :  { %s1851_s16 = smov 0   ;;  %s1853_s17 = smov 0  }
   0x7 LB: > { %s1253_s18 = sadd.s32 4294967295, %s1811_s17   ;;  %s1254_s19 = sadd.s32 4294967294, %s1811_s17   ;;  %s1811_s17 = sphi %s1853_s17, %s20_s17   ;;  %s1807_s16 = sphi %s1851_s16, %s2143_s16   ;;  %s1803_s15 = sphi %s1849_s15, %s2142_s15   ;;  %s1799_s14 = sphi %s1847_s14, %s2141_s14   ;;  %s1795_s13 = sphi %s1845_s13, %s2140_s13   ;;  %s1791_s12 = sphi %s1843_s12, %s2139_s12  }
   0x8   : > { %p61_p0 = scmp.ne.s32.totalorder %s1795_s13, %s1791_s12  ;;  %p1877_p1 = scmp.eq.s32.totalorder %s1253_s18, 0 }
   0x9   : > { %p1881_p2 = scmp.eq.s32.totalorder %s1253_s18, 1  ;;  %p147_p3 = scmp.eq.s32.totalorder %s1254_s19, 1 }
   0xa   : > { %s2126_s20 = scalar_select %p1877_p1, 1, 0 }
   0xb   : > { %p1887_p4 = por %p1877_p1, %p61_p0  ;;  %p1255_p5 = scmp.ge.s32.totalorder %s1811_s17, 1 }
   0xc   : > { %p1892_p6 = por %p147_p3, %p61_p0  ;;  %p154_p7 = scmp.lt.s32.totalorder %s1811_s17, 3 }
   0xd   : > { %s2128_s22 = scalar_select %p1887_p4, 1, 0 }
   0xe   : > { %s2129_s23 = scalar_select %p1892_p6, 1, 0 }
   0xf   : > { %p1897_p8 = pnand %p1255_p5, %p154_p7  ;;  %s1813_s25 = smov [#allocation6]  }
  0x10   : > { %s170_s26 = sshll.u32 %s1813_s25, 4  ;;  %s1814_s28 = smov [#allocation8]   ;;  %s1901_s26 = int_to_ptr.vmem [resolvable:$true] %s170_s26 }
  0x11   : > { %p1498_p9 = pneg %p1897_p8  ;;  %s186_s29 = sshll.u32 %s1814_s28, 4  ;;  %s1912_s29 = int_to_ptr.vmem [resolvable:$true] %s186_s29 }
  0x12   : > { %s1639_s5 = scalar_lea.hbm %s2119_s1, 8192 }
  0x13   : > { %p1908_p11 = pnand %p1498_p9, %p1877_p1  ;;  %p1640_p12 = scmp.ne.s32.totalorder %s2119_s1, %s1639_s5 }
  0x14   : > { %p1646_p5 = scmp.lt.u32.totalorder %s1639_s5, %s2119_s1 }
  0x15   : > { %p1641_p13 = pneg %p1908_p11 }
  0x17   : > { %p1642_p0 = pnand %p1641_p13, %p1640_p12 }
  0x19   : > { %p1643_p3 = pneg %p1642_p0 }
  0x1b   : > { %p1648_p7 = pnand %p1646_p5, %p1643_p3 }
  0x1d   : > { %1651 = shalt.err (!%p1648_p7)
}
  0x1e   : > { %s1652_s10 = scalar_lea.vmem %s1901_s26, 8192  ;;  %p1660_p1 = scmp.lt.s32.totalorder %s1901_s26, %s1901_s26 }
  0x1f   : > { %p1653_p9 = scmp.ne.s32.totalorder %s1901_s26, %s1652_s10  ;;  %p1661_p12 = scmp.lt.s32.totalorder %s1652_s10, %s1652_s10 }
  0x21   : > { %p1655_p10 = pnand %p1653_p9, %p1641_p13  ;;  %p1662_p0 = por %p1661_p12, %p1660_p1 }
  0x23   : > { %p1656_p6 = pneg %p1655_p10 }
  0x25   : > { %p1663_p4 = pnand %p1662_p0, %p1656_p6 }
  0x27   : > { %1666 = shalt.err (!%p1663_p4)
}
  0x28   : > { %s1815_s11 = smov 64   ;;  %s1816_s18 = smov 4  }
  0x29   : > { %1501 = dma.hbm_to_vmem [thread:$0]  (!%p1908_p11), %s2119_s1, 8192, %s1901_s26, [#allocation7], %s1815_s11, %s1815_s11, %s1816_s18  }
  0x2a   : > { %s1667_s4 = scalar_lea.hbm %s2120_s2, 16 }
  0x2b   : > { %p1668_p1 = scmp.ne.s32.totalorder %s2120_s2, %s1667_s4  ;;  %p1674_p10 = scmp.lt.u32.totalorder %s1667_s4, %s2120_s2 }
  0x2d   : > { %p1670_p4 = pnand %p1668_p1, %p1641_p13 }
  0x2f   : > { %p1671_p6 = pneg %p1670_p4 }
  0x31   : > { %p1676_p3 = pnand %p1674_p10, %p1671_p6 }
  0x33   : > { %1679 = shalt.err (!%p1676_p3)
}
  0x34   : > { %s1680_s26 = scalar_lea.vmem %s1912_s29, 16  ;;  %s1687_s9 = scalar_lea.vmem %s1912_s29, 32 }
  0x35   : > { %p1681_p5 = scmp.ne.s32.totalorder %s1912_s29, %s1680_s26  ;;  %p1688_p12 = scmp.lt.s32.totalorder %s1912_s29, %s1912_s29 }
  0x36   : > { %p1689_p0 = scmp.lt.s32.totalorder %s1687_s9, %s1680_s26 }
  0x37   : > { %p1683_p7 = pnand %p1681_p5, %p1641_p13 }
  0x38   : > { %p1690_p1 = por %p1689_p0, %p1688_p12 }
  0x39   : > { %p1684_p9 = pneg %p1683_p7 }
  0x3b   : > { %p1691_p4 = pnand %p1690_p1, %p1684_p9 }
  0x3d   : > { %1694 = shalt.err (!%p1691_p4)
}
  0x3e   : > { %1504 = dma.hbm_to_vmem [thread:$0]  (!%p1908_p11), %s2120_s2, 16, %s1912_s29, [#allocation7]  }
  0x3f   : > { %s39_s18 = sadd.s32 1, %s1807_s16  ;;  %s48_s19 = sadd.s32 1, %s1799_s14 }
  0x40   : > { %p41_p13 = scmp.ge.s32.totalorder %s39_s18, 2  ;;  %p55_p6 = scmp.ne.s32.totalorder %s1799_s14, %s1795_s13 }
  0x41   : > { %p56_p10 = scmp.eq.s32.totalorder %s1811_s17, 0  ;;  %p1515_p3 = scmp.lt.s32.totalorder %s1811_s17, 2 }
  0x42   : > { %s2145_s18 = smov (%p41_p13, %s39_s18), 0  ;;  %p1977_p7 = por %p1881_p2, %p55_p6 }
  0x43   : > { %p57_p5 = por %p56_p10, %p55_p6  ;;  %s43_s25 = ssub.s32 %s1807_s16, %s2145_s18 }
  0x44   : > { %s2132_s27 = scalar_select %p1977_p7, 1, 0 }
  0x45   : > { %s197_s28 = sand.u32 1, %s1799_s14   ;;  %p46_p9 = scmp.eq.s32.totalorder %s43_s25, 0 }
  0x46   : > { %s1259_s29 = sshll.u32 %s197_s28, 7  ;;  %s1357_s30 = sshll.u32 %s1807_s16, 11 }
  0x47   : > { %s1986_s4 = scalar_select %p46_p9, %s1799_s14, %s48_s19  }
  0x48   : > { %s1991_s7 = scalar_lea.hbm %s2118_s0, %s1357_s30  ;;  %s201_s21 = scalar_lea.vmem [#allocation3], %s1259_s29 }
  0x49   : > { %s210_s8 = sshll.u32 %s201_s21, 4  ;;  %p1995_p2 = pnand %p1515_p3, %p57_p5  ;;  %s1999_s8 = int_to_ptr.vmem [resolvable:$true] %s210_s8 }
  0x4a   : > { %s2001_s9 = scalar_lea.sflag [#allocation4], %s197_s28  ;;  %s1695_s10 = scalar_lea.hbm %s1991_s7, 2048 }
  0x4b   : > { %p1696_p11 = scmp.ne.s32.totalorder %s1991_s7, %s1695_s10  ;;  %p1697_p12 = pneg %p1995_p2 }
  0x4c   : > { %s1700_s25 = scalar_lea.hbm %s2118_s0, 4096  ;;  %p1701_p4 = scmp.lt.u32.totalorder %s1991_s7, %s2118_s0 }
  0x4d   : > { %p1698_p0 = pnand %p1697_p12, %p1696_p11  ;;  %p1702_p13 = scmp.lt.u32.totalorder %s1700_s25, %s1695_s10 }
  0x4e   : > { %p1704_p10 = scmp.lt.u32.totalorder %s1695_s10, %s1991_s7 }
  0x4f   : > { %p1699_p1 = pneg %p1698_p0  ;;  %p1703_p6 = por %p1702_p13, %p1701_p4 }
  0x51   : > { %p1705_p3 = por %p1704_p10, %p1703_p6 }
  0x53   : > { %p1706_p5 = pnand %p1705_p3, %p1699_p1 }
  0x55   : > { %1709 = shalt.err (!%p1706_p5)
}
  0x56   : > { %s1710_s28 = scalar_lea.vmem %s1999_s8, 2048  ;;  %s1817_s5 = smov [#allocation3]  }
  0x57   : > { %p1711_p9 = scmp.ne.s32.totalorder %s1999_s8, %s1710_s28  ;;  %s1715_s6 = sshll.u32 %s1817_s5, 4  ;;  %s1716_s6 = int_to_ptr.vmem [resolvable:$false] %s1715_s6 }
  0x58   : > { %s1717_s21 = scalar_lea.vmem %s1716_s6, 4096  ;;  %p1718_p7 = scmp.lt.s32.totalorder %s1999_s8, %s1716_s6 }
  0x59   : > { %p1713_p11 = pnand %p1711_p9, %p1697_p12  ;;  %p1719_p4 = scmp.lt.s32.totalorder %s1717_s21, %s1710_s28 }
  0x5b   : > { %p1714_p0 = pneg %p1713_p11  ;;  %p1720_p13 = por %p1719_p4, %p1718_p7 }
  0x5d   : > { %p1721_p6 = pnand %p1720_p13, %p1714_p0 }
  0x5f   : > { %1724 = shalt.err (!%p1721_p6)
}
  0x60   : > { %s1818_s10 = smov 512   ;;  %s1819_s11 = smov 32  }
  0x61   : > { %1508 = dma.hbm_to_vmem [thread:$0]  (!%p1995_p2), %s1991_s7, 2048, %s1999_s8, %s2001_s9, %s1818_s10, %s1818_s10, %s1819_s11  }
  0x62   : > { %222 = sbr.rel (%p1897_p8) target bundleno = 423 (0x1a7), region = 32  ;;  %s2032_s19 = sand.u32 (!%p1897_p8), 1, %s1795_s13  }
  0x63   : > { %s1263_s25 = sshll.u32 (!%p1897_p8), %s2032_s19, 7  ;;  %s225_s29 = scalar_lea.sflag (!%p1897_p8), [#allocation4], %s2032_s19 }
  0x64   : > { %s2036_s30 = scalar_lea.vmem (!%p1897_p8), [#allocation3], %s1263_s25  ;;  %p2134_p7 = scmp.ne.s32.totalorder (!%p1897_p8), %s2128_s22, 0 }
  0x69   : > { %1778 = dma.done.wait (%p2134_p7), %s225_s29, 2048  }
  0x6a   : > { %1780 = vsyncadd (%p2134_p7), %s225_s29, 4294965248  ;;  %p2135_p2 = scmp.ne.s32.totalorder %s2126_s20, 0 }
  0x6c   : > { %1782 = dma.done.wait (%p2135_p2), [#allocation7], 8208  }
  0x6d   : > { %1784 = vsyncadd (%p2135_p2), [#allocation7], 4294959088  ;;  %v1575_v0 = vld [vmem:[#allocation6 + $0x40] sm:$0xff]   ;;  %v1579_v4 = vld [vmem:[#allocation6 + $0x48] sm:$0xff]   ;;  %s1266_s20 = sshll.u32 %s2032_s19, 4  ;;  %s1362_s7 = sshll.u32 %s1803_s15, 8 }
  0x6e   : > { %v1576_v1 = vld [vmem:[#allocation6 + $0xc0] sm:$0xff]   ;;  %1374 = vmatprep.subr.bf16.mxu0 %v1575_v0  ;;  %v1580_v5 = vld [vmem:[#allocation6 + $0xc8] sm:$0xff]   ;;  %v1583_v8 = vld [vmem:[#allocation6 + $0x50] sm:$0xff]   ;;  %s258_s22 = scalar_lea.vmem [#allocation9], %s1266_s20  ;;  %s2067_s9 = scalar_lea.hbm %s2121_s3, %s1362_s7 }
  0x6f   : > { %v1577_v2 = vld [vmem:[#allocation6] sm:$0xff]   ;;  %1402 = vmatprep.subr.bf16.mxu1 %v1576_v1  ;;  %v1581_v6 = vld [vmem:[#allocation6 + $0x8] sm:$0xff]   ;;  %v1584_v9 = vld [vmem:[#allocation6 + $0xd0] sm:$0xff]   ;;  %s1139_s24 = sshll.u32 %s258_s22, 4  ;;  %s1125_s28 = scalar_lea.sflag [#allocation5], %s2032_s19  ;;  %s2069_s24 = int_to_ptr.vmem [resolvable:$true] %s1139_s24 }
  0x70   : > { %v1578_v3 = vld [vmem:[#allocation6 + $0x80] sm:$0xff]   ;;  %1375 = vmatpush3.bf16.msra.mxu0 %v1577_v2  ;;  %v1582_v7 = vld [vmem:[#allocation6 + $0x88] sm:$0xff]   ;;  %v1585_v10 = vld [vmem:[#allocation6 + $0x10] sm:$0xff]   ;;  %s1725_s5 = scalar_lea.vmem %s2069_s24, 256  ;;  %p2136_p12 = scmp.ne.s32.totalorder %s2132_s27, 0 }
  0x71   : > { %1403 = vmatpush3.bf16.msra.mxu1 %v1578_v3  ;;  %1376 = vmatprep.subr.bf16.mxu0 %v1579_v4  ;;  %v1586_v11 = vld [vmem:[#allocation6 + $0x90] sm:$0xff]   ;;  %v1587_v12 = vld [vmem:[#allocation6 + $0x58] sm:$0xff]   ;;  %v1591_v16 = vld [vmem:[#allocation6 + $0x60] sm:$0xff]   ;;  %p1726_p8 = scmp.ne.s32.totalorder %s2069_s24, %s1725_s5  ;;  %s1820_s15 = smov [#allocation9]  }
  0x72   : > { %1404 = vmatprep.subr.bf16.mxu1 %v1580_v5  ;;  %v1588_v13 = vld [vmem:[#allocation6 + $0xd8] sm:$0xff]   ;;  %v1592_v17 = vld [vmem:[#allocation6 + $0xe0] sm:$0xff]   ;;  %v1595_v20 = vld [vmem:[#allocation6 + $0x68] sm:$0xff]   ;;  %s1729_s6 = sshll.u32 %s1820_s15, 4  ;;  %s1730_s6 = int_to_ptr.vmem [resolvable:$false] %s1729_s6 }
  0x73   : > { %v1589_v14 = vld [vmem:[#allocation6 + $0x18] sm:$0xff]   ;;  %v1593_v18 = vld [vmem:[#allocation6 + $0x20] sm:$0xff]   ;;  %v1596_v21 = vld [vmem:[#allocation6 + $0xe8] sm:$0xff]   ;;  %p1727_p1 = pnand %p1726_p8, %p2136_p12  ;;  %s1731_s21 = scalar_lea.vmem %s1730_s6, 512 }
  0x74   : > { %1377 = vmatpush3.bf16.msra.mxu0 %v1581_v6  ;;  %v1590_v15 = vld [vmem:[#allocation6 + $0x98] sm:$0xff]   ;;  %v1594_v19 = vld [vmem:[#allocation6 + $0xa0] sm:$0xff]   ;;  %v1597_v22 = vld [vmem:[#allocation6 + $0x28] sm:$0xff]   ;;  %p1732_p3 = scmp.lt.s32.totalorder %s2069_s24, %s1730_s6  ;;  %p1733_p5 = scmp.lt.s32.totalorder %s1731_s21, %s1725_s5 }
  0x75   : > { %1405 = vmatpush3.bf16.msra.mxu1 %v1582_v7  ;;  %1378 = vmatprep.subr.bf16.mxu0 %v1583_v8  ;;  %v1598_v23 = vld [vmem:[#allocation6 + $0xa8] sm:$0xff]   ;;  %v1599_v24 = vld [vmem:[#allocation6 + $0x70] sm:$0xff]   ;;  %v1603_v28 = vld [vmem:[#allocation6 + $0x78] sm:$0xff]   ;;  %p1728_p10 = pneg %p1727_p1 }
  0x76   : > { %1406 = vmatprep.subr.bf16.mxu1 %v1584_v9  ;;  %v1600_v25 = vld [vmem:[#allocation6 + $0xf0] sm:$0xff]   ;;  %v1604_v29 = vld [vmem:[#allocation6 + $0xf8] sm:$0xff]   ;;  %v274_v32 = vld [vmem:[%s2036_s30] sm:$0xff]  ;;  %p1734_p9 = por %p1733_p5, %p1732_p3 }
  0x77   : > { %v1601_v26 = vld [vmem:[#allocation6 + $0x30] sm:$0xff]   ;;  %v1605_v30 = vld [vmem:[#allocation6 + $0x38] sm:$0xff]   ;;  %v278_v33 = vld [vmem:[%s2036_s30 + $0x20] sm:$0xff] }
  0x78   : > { %1379 = vmatpush3.bf16.msra.mxu0 %v1585_v10  ;;  %v1602_v27 = vld [vmem:[#allocation6 + $0xb0] sm:$0xff]   ;;  %v1606_v31 = vld [vmem:[#allocation6 + $0xb8] sm:$0xff]   ;;  %v275_v34 = vld [vmem:[%s2036_s30 + $0x8] sm:$0xff]  ;;  %v1267_v35 = vcombine.low %v274_v32, %v278_v33  ;;  %v1268_v36 = vcombine.high %v274_v32, %v278_v33  ;;  %p1735_p11 = pnand %p1734_p9, %p1728_p10 }
  0x79   : > { %1407 = vmatpush3.bf16.msra.mxu1 %v1586_v11  ;;  %1380 = vmatprep.subr.bf16.mxu0 %v1587_v12  ;;  %v279_v37 = vld [vmem:[%s2036_s30 + $0x28] sm:$0xff]  ;;  %v1607_v40 = vld [vmem:[#allocation6 + $0x140] sm:$0xff]   ;;  %v1615_v48 = vld [vmem:[#allocation6 + $0x150] sm:$0xff]  }
  0x7a   : > { %1408 = vmatprep.subr.bf16.mxu1 %v1588_v13  ;;  %v1269_v38 = vcombine.low %v275_v34, %v279_v37  ;;  %v1270_v39 = vcombine.high %v275_v34, %v279_v37  ;;  %914 = vmatprep.mubr.bf16.mxu0 %v1268_v36  ;;  %v1608_v41 = vld [vmem:[#allocation6 + $0x1c0] sm:$0xff]   ;;  %v1611_v44 = vld [vmem:[#allocation6 + $0x148] sm:$0xff]   ;;  %v1616_v49 = vld [vmem:[#allocation6 + $0x1d0] sm:$0xff]  }
  0x7b   : > { %v1609_v42 = vld [vmem:[#allocation6 + $0x100] sm:$0xff]   ;;  %v1612_v45 = vld [vmem:[#allocation6 + $0x1c8] sm:$0xff]   ;;  %v1617_v50 = vld [vmem:[#allocation6 + $0x110] sm:$0xff]  }
  0x7c   : > { %1381 = vmatpush3.bf16.msra.mxu0 %v1589_v14  ;;  %963 = vmatprep.mubr.bf16.mxu1 %v1270_v39  ;;  %v1610_v43 = vld [vmem:[#allocation6 + $0x180] sm:$0xff]   ;;  %v1613_v46 = vld [vmem:[#allocation6 + $0x108] sm:$0xff]   ;;  %v1618_v51 = vld [vmem:[#allocation6 + $0x190] sm:$0xff]  }
  0x7d   : > { %1409 = vmatpush3.bf16.msra.mxu1 %v1590_v15  ;;  %1382 = vmatprep.subr.bf16.mxu0 %v1591_v16  ;;  %v1614_v47 = vld [vmem:[#allocation6 + $0x188] sm:$0xff]   ;;  %v1619_v52 = vld [vmem:[#allocation6 + $0x158] sm:$0xff]   ;;  %v1623_v56 = vld [vmem:[#allocation6 + $0x160] sm:$0xff]  }
  0x7e   : > { %1410 = vmatprep.subr.bf16.mxu1 %v1592_v17  ;;  %v1620_v53 = vld [vmem:[#allocation6 + $0x1d8] sm:$0xff]   ;;  %v1624_v57 = vld [vmem:[#allocation6 + $0x1e0] sm:$0xff]   ;;  %v283_v63 = vld [vmem:[%s2036_s30 + $0x48] sm:$0xff] }
  0x7f   : > { %v1621_v54 = vld [vmem:[#allocation6 + $0x118] sm:$0xff]   ;;  %v1625_v58 = vld [vmem:[#allocation6 + $0x120] sm:$0xff]   ;;  %v287_v0 = vld [vmem:[%s2036_s30 + $0x68] sm:$0xff] }
  0x80   : > { %1383 = vmatpush3.bf16.msra.mxu0 %v1593_v18  ;;  %v1622_v55 = vld [vmem:[#allocation6 + $0x198] sm:$0xff]   ;;  %v1626_v59 = vld [vmem:[#allocation6 + $0x1a0] sm:$0xff]   ;;  %v1278_v2 = vcombine.high %v283_v63, %v287_v0  ;;  %v1627_v3 = vld [vmem:[#allocation6 + $0x168] sm:$0xff]   ;;  %v1277_v4 = vcombine.low %v283_v63, %v287_v0 }
  0x81   : > { %1411 = vmatpush3.bf16.msra.mxu1 %v1594_v19  ;;  %1384 = vmatprep.subr.bf16.mxu0 %v1595_v20  ;;  %v282_v60 = vld [vmem:[%s2036_s30 + $0x40] sm:$0xff]  ;;  %v1628_v5 = vld [vmem:[#allocation6 + $0x1e8] sm:$0xff]   ;;  %v1631_v8 = vld [vmem:[#allocation6 + $0x170] sm:$0xff]  }
  0x82   : > { %1412 = vmatprep.subr.bf16.mxu1 %v1596_v21  ;;  %v286_v61 = vld [vmem:[%s2036_s30 + $0x60] sm:$0xff]  ;;  %v1629_v6 = vld [vmem:[#allocation6 + $0x128] sm:$0xff]   ;;  %v1632_v9 = vld [vmem:[#allocation6 + $0x1f0] sm:$0xff]  }
  0x83   : > { %v1276_v62 = vcombine.high %v282_v60, %v286_v61  ;;  %v1275_v1 = vcombine.low %v282_v60, %v286_v61  ;;  %v1630_v7 = vld [vmem:[#allocation6 + $0x1a8] sm:$0xff]   ;;  %v1633_v10 = vld [vmem:[#allocation6 + $0x130] sm:$0xff]   ;;  %v1635_v12 = vld [vmem:[#allocation6 + $0x178] sm:$0xff]  }
  0x84   : > { %1385 = vmatpush3.bf16.msra.mxu0 %v1597_v22  ;;  %v1634_v11 = vld [vmem:[#allocation6 + $0x1b0] sm:$0xff]   ;;  %v1636_v13 = vld [vmem:[#allocation6 + $0x1f8] sm:$0xff]  }
  0x85   : > { %1413 = vmatpush3.bf16.msra.mxu1 %v1598_v23  ;;  %1386 = vmatprep.subr.bf16.mxu0 %v1599_v24  ;;  %v1637_v14 = vld [vmem:[#allocation6 + $0x138] sm:$0xff]   ;;  %v276_v16 = vld [vmem:[%s2036_s30 + $0x10] sm:$0xff] }
  0x86   : > { %1414 = vmatprep.subr.bf16.mxu1 %v1600_v25  ;;  %v1638_v15 = vld [vmem:[#allocation6 + $0x1b8] sm:$0xff]   ;;  %v280_v17 = vld [vmem:[%s2036_s30 + $0x30] sm:$0xff] }
  0x87   : > { %v277_v18 = vld [vmem:[%s2036_s30 + $0x18] sm:$0xff]  ;;  %v1271_v20 = vcombine.low %v276_v16, %v280_v17  ;;  %v1272_v21 = vcombine.high %v276_v16, %v280_v17  ;;  %v284_v24 = vld [vmem:[%s2036_s30 + $0x50] sm:$0xff] }
  0x88   : > { %1387 = vmatpush3.bf16.msra.mxu0 %v1601_v26  ;;  %v281_v19 = vld [vmem:[%s2036_s30 + $0x38] sm:$0xff]  ;;  %v288_v25 = vld [vmem:[%s2036_s30 + $0x70] sm:$0xff] }
  0x89   : > { %1415 = vmatpush3.bf16.msra.mxu1 %v1602_v27  ;;  %1388 = vmatprep.subr.bf16.mxu0 %v1603_v28  ;;  %v1273_v22 = vcombine.low %v277_v18, %v281_v19  ;;  %v1274_v23 = vcombine.high %v277_v18, %v281_v19  ;;  %v285_v26 = vld [vmem:[%s2036_s30 + $0x58] sm:$0xff]  ;;  %v1280_v27 = vcombine.high %v284_v24, %v288_v25 }
  0x8a   : > { %1416 = vmatprep.subr.bf16.mxu1 %v1604_v29  ;;  %v289_v28 = vld [vmem:[%s2036_s30 + $0x78] sm:$0xff] }
  0x8b   : > { %v1282_v29 = vcombine.high %v285_v26, %v289_v28 }
  0x8c   : > { %1389 = vmatpush3.bf16.msra.mxu0 %v1605_v30  ;;  %v1279_v30 = vcombine.low %v284_v24, %v288_v25 }
  0x8d   : > { %1417 = vmatpush3.bf16.msra.mxu1 %v1606_v31  ;;  %1430 = vmatprep.subr.bf16.mxu0 %v1607_v40  ;;  %v1281_v31 = vcombine.low %v285_v26, %v289_v28 }
  0x8e   : > { %1458 = vmatprep.subr.bf16.mxu1 %v1608_v41 }
  0x8f   : > { %915 = vmatmul.mubr.bf16.vlgmr.msra.gmra.mrb[0].mxu0 %v1267_v35 }
  0x90   : > { %964 = vmatmul.mubr.bf16.vlgmr.msra.gmra.mrb[0].mxu1 %v1269_v38  ;;  %1431 = vmatpush3.bf16.msra.mxu0 %v1609_v42 }
  0x91   : > { %1459 = vmatpush3.bf16.msra.mxu1 %v1610_v43  ;;  %1432 = vmatprep.subr.bf16.mxu0 %v1611_v44 }
  0x92   : > { %1460 = vmatprep.subr.bf16.mxu1 %v1612_v45  ;;  %922 = vmatprep.mubr.bf16.mxu0 %v1276_v62 }
  0x93   : > { %971 = vmatprep.mubr.bf16.mxu1 %v1278_v2 }
  0x94   : > { %1433 = vmatpush3.bf16.msra.mxu0 %v1613_v46 }
  0x95   : > { %1461 = vmatpush3.bf16.msra.mxu1 %v1614_v47  ;;  %1434 = vmatprep.subr.bf16.mxu0 %v1615_v48 }
  0x96   : > { %1462 = vmatprep.subr.bf16.mxu1 %v1616_v49 }
  0x97   : > { %923 = vmatmul.mubr.bf16.gmra.mrb[4].mxu0 %v1275_v1 }
  0x98   : > { %1435 = vmatpush3.bf16.msra.mxu0 %v1617_v50  ;;  %972 = vmatmul.mubr.bf16.gmra.mrb[4].mxu1 %v1277_v4 }
  0x99   : > { %1463 = vmatpush3.bf16.msra.mxu1 %v1618_v51  ;;  %1436 = vmatprep.subr.bf16.mxu0 %v1619_v52 }
  0x9a   : > { %1464 = vmatprep.subr.bf16.mxu1 %v1620_v53  ;;  %1012 = vmatprep.mubr.bf16.mxu0 %v1272_v21 }
  0x9b   : > { %1061 = vmatprep.mubr.bf16.mxu1 %v1274_v23 }
  0x9c   : > { %1437 = vmatpush3.bf16.msra.mxu0 %v1621_v54 }
  0x9d   : > { %1465 = vmatpush3.bf16.msra.mxu1 %v1622_v55  ;;  %1438 = vmatprep.subr.bf16.mxu0 %v1623_v56 }
  0x9e   : > { %1466 = vmatprep.subr.bf16.mxu1 %v1624_v57 }
  0xa0   : > { %1439 = vmatpush3.bf16.msra.mxu0 %v1625_v58 }
  0xa1   : > { %1467 = vmatpush3.bf16.msra.mxu1 %v1626_v59  ;;  %1440 = vmatprep.subr.bf16.mxu0 %v1627_v3 }
  0xa2   : > { %1468 = vmatprep.subr.bf16.mxu1 %v1628_v5 }
  0xa4   : > { %1441 = vmatpush3.bf16.msra.mxu0 %v1629_v6 }
  0xa5   : > { %1469 = vmatpush3.bf16.msra.mxu1 %v1630_v7  ;;  %1442 = vmatprep.subr.bf16.mxu0 %v1631_v8 }
  0xa6   : > { %1470 = vmatprep.subr.bf16.mxu1 %v1632_v9 }
  0xa8   : > { %1443 = vmatpush3.bf16.msra.mxu0 %v1633_v10 }
  0xa9   : > { %1471 = vmatpush3.bf16.msra.mxu1 %v1634_v11  ;;  %1444 = vmatprep.subr.bf16.mxu0 %v1635_v12  ;;  %v1347_v11 = vld [vmem:[#allocation8] ss:$0 sm:$0xff] }
  0xaa   : > { %1472 = vmatprep.subr.bf16.mxu1 %v1636_v13 }
  0xac   : > { %1445 = vmatpush3.bf16.msra.mxu0 %v1637_v14 }
  0xad   : > { %1473 = vmatpush3.bf16.msra.mxu1 %v1638_v15 }
  0xaf   : > { %1013 = vmatmul.mubr.bf16.vlgmr.msra.gmra.mrb[8].mxu0 %v1271_v20 }
  0xb0   : > { %1062 = vmatmul.mubr.bf16.vlgmr.msra.gmra.mrb[8].mxu1 %v1273_v22  ;;  %1020 = vmatprep.mubr.bf16.mxu0 %v1280_v27 }
  0xb1   : > { %1069 = vmatprep.mubr.bf16.mxu1 %v1282_v29 }
  0xb7   : > { %1021 = vmatmul.mubr.bf16.gmra.mrb[12].mxu0 %v1279_v30 }
  0xb8   : > { %1070 = vmatmul.mubr.bf16.gmra.mrb[12].mxu1 %v1281_v31 }
 0x162   : > { %v1390_v32 = vpop.f32.mrb[0].mxu0 }
 0x163   : > { %v1418_v33 = vpop.f32.mrb[0].mxu1  ;;  %v1391_v34 = vpop.f32.mrb[1].mxu0 }
 0x164   : > { %v1392_v35 = vadd.f32 %v1391_v34, %v1390_v32  ;;  %v1419_v36 = vpop.f32.mrb[1].mxu1  ;;  %v1393_v37 = vpop.f32.mrb[2].mxu0 }
 0x165   : > { %v1420_v38 = vadd.f32 %v1419_v36, %v1418_v33  ;;  %v1421_v39 = vpop.f32.mrb[2].mxu1  ;;  %v1394_v40 = vpop.f32.mrb[3].mxu0 }
 0x166   : > { %v1395_v41 = vadd.f32 %v1394_v40, %v1393_v37  ;;  %v1422_v42 = vpop.f32.mrb[3].mxu1 }
 0x167   : > { %v966_v43 = vadd.f32 %v1420_v38, %v1392_v35  ;;  %v1423_v44 = vadd.f32 %v1422_v42, %v1421_v39 }
 0x169   : > { %v969_v45 = vadd.f32 %v1423_v44, %v1395_v41 }
 0x16a   : > { %v1396_v46 = vpop.f32.mrb[4].mxu0 }
 0x16b   : > { %v1424_v47 = vpop.f32.mrb[4].mxu1  ;;  %v1397_v48 = vpop.f32.mrb[5].mxu0 }
 0x16c   : > { %v1398_v49 = vadd.f32 %v1397_v48, %v1396_v46  ;;  %v1425_v50 = vpop.f32.mrb[5].mxu1  ;;  %v1399_v51 = vpop.f32.mrb[6].mxu0 }
 0x16d   : > { %v1426_v52 = vadd.f32 %v1425_v50, %v1424_v47  ;;  %v1427_v53 = vpop.f32.mrb[6].mxu1  ;;  %v1400_v54 = vpop.f32.mrb[7].mxu0 }
 0x16e   : > { %v1401_v55 = vadd.f32 %v1400_v54, %v1399_v51  ;;  %v1428_v56 = vpop.f32.mrb[7].mxu1 }
 0x16f   : > { %v974_v57 = vadd.f32 %v1426_v52, %v1398_v49  ;;  %v1429_v58 = vadd.f32 %v1428_v56, %v1427_v53 }
 0x171   : > { %v977_v59 = vadd.f32 %v1429_v58, %v1401_v55 }
 0x182   : > { %v1446_v60 = vpop.f32.mrb[8].mxu0 }
 0x183   : > { %v1474_v61 = vpop.f32.mrb[8].mxu1  ;;  %v1447_v62 = vpop.f32.mrb[9].mxu0 }
 0x184   : > { %v1475_v63 = vpop.f32.mrb[9].mxu1  ;;  %v1448_v0 = vadd.f32 %v1447_v62, %v1446_v60  ;;  %v1449_v2 = vpop.f32.mrb[10].mxu0 }
 0x185   : > { %v1476_v1 = vadd.f32 %v1475_v63, %v1474_v61  ;;  %v1477_v3 = vpop.f32.mrb[10].mxu1  ;;  %v1450_v4 = vpop.f32.mrb[11].mxu0 }
 0x186   : > { %v1478_v5 = vpop.f32.mrb[11].mxu1  ;;  %v1015_v6 = vadd.f32 %v1448_v0, %v966_v43  ;;  %v1451_v7 = vadd.f32 %v1450_v4, %v1449_v2 }
 0x187   : > { %v1479_v8 = vadd.f32 %v1478_v5, %v1477_v3 }
 0x188   : > { %v1064_v9 = vadd.f32 %v1476_v1, %v1015_v6  ;;  %v1018_v10 = vadd.f32 %v1451_v7, %v969_v45 }
 0x18a   : > { %v1067_v12 = vadd.f32 %v1479_v8, %v1018_v10  ;;  %v1452_v13 = vpop.f32.mrb[12].mxu0  ;;  %v1100_v17 = vadd.f32 %v1347_v11, %v1064_v9 }
 0x18b   : > { %v1480_v14 = vpop.f32.mrb[12].mxu1  ;;  %v1453_v15 = vpop.f32.mrb[13].mxu0 }
 0x18c   : > { %v1481_v16 = vpop.f32.mrb[13].mxu1  ;;  %v1101_v18 = vadd.f32 %v1347_v11, %v1067_v12  ;;  %v1454_v19 = vadd.f32 %v1453_v15, %v1452_v13  ;;  %v1455_v21 = vpop.f32.mrb[14].mxu0 }
 0x18d   : > { %v1482_v20 = vadd.f32 %v1481_v16, %v1480_v14  ;;  %v1483_v22 = vpop.f32.mrb[14].mxu1  ;;  %v1456_v23 = vpop.f32.mrb[15].mxu0 }
 0x18e   : > { %v1484_v24 = vpop.f32.mrb[15].mxu1  ;;  %v1366_v25 = vpack.c.bf16 %v1101_v18, %v1100_v17  ;;  %v1023_v26 = vadd.f32 %v1454_v19, %v974_v57  ;;  %v1457_v27 = vadd.f32 %v1456_v23, %v1455_v21 }
 0x18f   : > { %v1485_v28 = vadd.f32 %v1484_v24, %v1483_v22 }
 0x190   : > { %1367 = vst [vmem:[%s258_s22] sm:$0xff] %v1366_v25   ;;  %v1072_v29 = vadd.f32 %v1482_v20, %v1023_v26  ;;  %v1026_v30 = vadd.f32 %v1457_v27, %v977_v59 }
 0x192   : > { %v1075_v31 = vadd.f32 %v1485_v28, %v1026_v30  ;;  %v1102_v32 = vadd.f32 %v1347_v11, %v1072_v29 }
 0x194   : > { %v1103_v33 = vadd.f32 %v1347_v11, %v1075_v31 }
 0x196   : > { %v1371_v34 = vpack.c.bf16 %v1103_v33, %v1102_v32 }
 0x198   : > { %1373 = vst [vmem:[%s258_s22 + $0x8] sm:$0xff] %v1371_v34  }
 0x199   : > { %1738 = shalt.err (!%p1735_p11)
}
 0x19a   : > { %s1739_s10 = scalar_lea.hbm %s2067_s9, 256  ;;  %s1743_s29 = scalar_lea.hbm %s2121_s3, 512 }
 0x19b   : > { %p1740_p0 = scmp.ne.s32.totalorder %s2067_s9, %s1739_s10  ;;  %p1744_p6 = scmp.lt.u32.totalorder %s2067_s9, %s2121_s3 }
 0x19c   : > { %p1745_p7 = scmp.lt.u32.totalorder %s1743_s29, %s1739_s10  ;;  %p1747_p8 = scmp.lt.u32.totalorder %s1739_s10, %s2067_s9 }
 0x19d   : > { %p1741_p4 = pnand %p1740_p0, %p2136_p12 }
 0x19e   : > { %p1746_p2 = por %p1745_p7, %p1744_p6 }
 0x19f   : > { %p1742_p13 = pneg %p1741_p4 }
 0x1a0   : > { %p1748_p1 = por %p1747_p8, %p1746_p2 }
 0x1a2   : > { %p1749_p10 = pnand %p1748_p1, %p1742_p13 }
 0x1a4   : > { %1752 = shalt.err (!%p1749_p10)
}
 0x1a5   : > { %s1821_s22 = smov 64   ;;  %s1822_s7 = smov 4  }
 0x1a6   : > { %1496 = dma.vmem_to_hbm [thread:$0]  (%p2136_p12), %s2069_s24, 256, %s2067_s9, %s1125_s28, %s1821_s22, %s1821_s22, %s1822_s7  }
 0x1a7 PF: > { %s1154_s8 = sand.u32 1, %s1791_s12   ;;  %p2137_p3 = scmp.ne.s32.totalorder %s2129_s23, 0 }
 0x1a8   : > { %p2138_p5 = scmp.ge.s32.totalorder %s1811_s17, 2  ;;  %s1155_s26 = scalar_lea.sflag [#allocation5], %s1154_s8 }
 0x1aa   : > { %p1510_p9 = pnand %p2138_p5, %p2137_p3 }
 0x1ac   : > { %1786 = dma.done.wait (!%p1510_p9), %s1155_s26, 256  }
 0x1ad   : > { %1788 = vsyncadd (!%p1510_p9), %s1155_s26, 4294967040  ;;  %s20_s17 = sadd.s32 1, %s1811_s17   ;;  %s2139_s12 = smov %s1795_s13 }
 0x1ae   : > { %p17_p11 = scmp.ge.s32.totalorder %s20_s17, 4   ;;  %s2140_s13 = smov %s1799_s14 }
 0x1af   : > { %s2141_s14 = smov %s1986_s4  ;;  %s2142_s15 = smov %s1807_s16 }
 0x1b0   : > { %s2143_s16 = smov %s2145_s18  ;;  %19 = sbr.rel (!%p17_p11) target bundleno = 7 (0x7), region = 95 }
 0x1b7   :  { %1160 = vsyncpa [#allocation4], 1 }
 0x1b8   :  { %1162 = vsyncpa [#allocation4 + $0x1], 1 }
 0x1b9   :  { %1163 = vsyncpa [#allocation7], 1 }
 0x1ba   :  { %1164 = vsyncpa [#allocation5], 1 }
 0x1bb   :  { %1166 = vsyncpa [#allocation5 + $0x1], 1 }

</bundles_post_ra>
